<compile_context>
chip_gen: v5e
topology: v5e:2x2
jax: 0.10.0
libtpu: 0.0.40
codegen_flags: <defaults>
</compile_context>

<pallas_src>
import numpy as np
import jax
import jax.numpy as jnp
from jax.experimental import pallas as pl
from jax.experimental.pallas import tpu as pltpu

HID = 32        # A3TGCN2 out_channels
N_OUT = 6       # linear2 out features
N_NODES = 21    # linear2 in features == number of graph nodes (MTM hand joints)


def _make_kernel(B, T, F):
    BC = B * HID              # lanes per period block  (128 when B == 4)

    def kernel(probs_ref,             # SMEM (T,)           softmax(attention)
               a_ref,                 # (N, N)              GCN-normalized adjacency
               xrep_ref,              # (F, N, T*B*HID)     x replicated along channel lanes
               wz_ref, wh_ref,        # (F, 1, T*B*HID)     effective gate weights, lane-tiled
               bz_ref, bh_ref,        # (1, T*B*HID)        effective gate biases,  lane-tiled
               w1_ref, b1_ref,        # (HID, T), (1, T)    self.linear
               w2_ref, b2_ref,        # (N_OUT, N), (N_OUT, 1)  self.linear2
               out_ref):              # (N_OUT, B*T)
        # ---- GCN feature lift: K=3 contraction as VPU fused multiply-adds ----------
        gz = xrep_ref[0] * wz_ref[0]
        gh = xrep_ref[0] * wh_ref[0]
        for f in range(1, F):
            xf = xrep_ref[f]
            gz = gz + xf * wz_ref[f]
            gh = gh + xf * wh_ref[f]

        # ---- graph propagation: one wide bf16 MXU matmul per gate, f32 accumulate --
        a_bf = a_ref[...].astype(jnp.bfloat16)
        pz = jnp.dot(a_bf, gz.astype(jnp.bfloat16),
                     preferred_element_type=jnp.float32) + bz_ref[...]
        ph = jnp.dot(a_bf, gh.astype(jnp.bfloat16),
                     preferred_element_type=jnp.float32) + bh_ref[...]

        # ---- GRU gates with H=None (r-gate and all h_prev terms are exactly zero) --
        z = jax.nn.sigmoid(pz)
        h_tilde = jnp.tanh(ph)
        h_new = (1.0 - z) * h_tilde                 # (N, T*B*HID), lanes = (t, b, c)

        # ---- attention-weighted sum over periods (static, lane-aligned slices) -----
        acc = probs_ref[0] * h_new[:, 0:BC]
        for t in range(1, T):
            acc = acc + probs_ref[t] * h_new[:, t * BC:(t + 1) * BC]
        h = jnp.maximum(acc, 0.0)                   # relu, (N, B*HID), lanes = (b, c)

        # ---- linear(32 -> T) then linear2(21 -> 6), per batch lane-block -----------
        w1 = w1_ref[...]
        b1 = b1_ref[...]
        w2 = w2_ref[...]
        b2 = b2_ref[...]
        for b in range(B):
            hb = h[:, b * HID:(b + 1) * HID]                                    # (N, HID)
            h1 = jnp.dot(hb, w1, preferred_element_type=jnp.float32) + b1       # (N, T)
            ob = jnp.dot(w2, h1, preferred_element_type=jnp.float32) + b2       # (N_OUT, T)
            out_ref[:, b * T:(b + 1) * T] = ob

    return kernel


def gcn_norm_dense(edge_index, num_nodes):
    """Dense symmetric GCN normalization: D^-1/2 (A + I) D^-1/2."""
    src, dst = edge_index[0], edge_index[1]
    a = jnp.zeros((num_nodes, num_nodes), jnp.float32)
    a = a.at[dst, src].add(1.0)
    a = a + jnp.eye(num_nodes, dtype=jnp.float32)      # add_self_loops=True
    deg = jnp.sum(a, axis=1)
    dinv = jax.lax.rsqrt(deg)
    return dinv[:, None] * a * dinv[None, :]


def attention_gat_forward(x, edge_index, params):
    B, N, F, T = x.shape
    assert N == N_NODES
    BC = B * HID
    TBC = T * BC

    a_hat = gcn_norm_dense(edge_index, N)
    probs = jax.nn.softmax(params["attention"]).astype(jnp.float32)

    # ---- fold GCNConv weights with the (zero-H) gate linears: exact algebra --------
    lz = params["lin_z_w"][:, :HID]                       # (HID, HID)
    lh = params["lin_h_w"][:, :HID]
    w_eff_z = params["conv_z_w"].T @ lz.T                 # (F, HID)
    w_eff_h = params["conv_h_w"].T @ lh.T
    b_eff_z = params["conv_z_b"] @ lz.T + params["lin_z_b"]        # (HID,)
    b_eff_h = params["conv_h_b"] @ lh.T + params["lin_h_b"]

    # ---- layout plumbing only (all arithmetic stays inside the kernel) -------------
    # lane index = t*(B*HID) + b*HID + c
    xc = jnp.transpose(x, (2, 1, 3, 0)).astype(jnp.float32)        # (F, N, T, B)
    xrep = jnp.broadcast_to(xc[..., None], (F, N, T, B, HID)).reshape(F, N, TBC)
    wz_rows = jnp.tile(w_eff_z, (1, T * B))[:, None, :].astype(jnp.float32)   # (F, 1, TBC)
    wh_rows = jnp.tile(w_eff_h, (1, T * B))[:, None, :].astype(jnp.float32)
    bz_row = jnp.tile(b_eff_z, T * B)[None, :].astype(jnp.float32)            # (1, TBC)
    bh_row = jnp.tile(b_eff_h, T * B)[None, :].astype(jnp.float32)

    w1 = params["linear_w"].T.astype(jnp.float32)                  # (HID, T)
    b1 = params["linear_b"][None, :].astype(jnp.float32)           # (1, T)
    w2 = params["linear2_w"].astype(jnp.float32)                   # (N_OUT, N)
    b2 = params["linear2_b"][:, None].astype(jnp.float32)          # (N_OUT, 1)

    kernel = _make_kernel(B, T, F)

    def full(shape):
        return pl.BlockSpec(shape, lambda i, _n=len(shape): (0,) * _n)

    in_specs = [
        pl.BlockSpec(memory_space=pltpu.MemorySpace.SMEM),   # probs (T,)
        full((N, N)),
        full((F, N, TBC)),
        full((F, 1, TBC)), full((F, 1, TBC)),
        full((1, TBC)), full((1, TBC)),
        full((HID, T)), full((1, T)),
        full((N_OUT, N)), full((N_OUT, 1)),
    ]

    out_flat = pl.pallas_call(
        kernel,
        grid=(1,),
        in_specs=in_specs,
        out_specs=pl.BlockSpec((N_OUT, B * T), lambda i: (0, 0)),
        out_shape=jax.ShapeDtypeStruct((N_OUT, B * T), jnp.float32),
        compiler_params=pltpu.CompilerParams(dimension_semantics=("arbitrary",)),
    )(probs, a_hat, xrep, wz_rows, wh_rows, bz_row, bh_row, w1, b1, w2, b2)

    # (N_OUT, B*T) with columns (b, t)  ->  (B, N_OUT, T), matching torch output.
    return jnp.transpose(out_flat.reshape(N_OUT, B, T), (1, 0, 2))


# jit so graph-norm / softmax / weight folding / layout tiling are compiled once per
# shape and the per-call work is essentially just the pallas_call.
attention_gat_forward = jax.jit(attention_gat_forward)


def init_params(key, node_features, periods):
    ks = jax.random.split(key, 17)
    w = lambda k, shape, s=0.2: s * jax.random.normal(k, shape, jnp.float32)
    return {
        "attention": jax.random.uniform(ks[0], (periods,), jnp.float32),
        "conv_z_w": w(ks[1], (HID, node_features)), "conv_z_b": w(ks[2], (HID,)),
        "conv_r_w": w(ks[3], (HID, node_features)), "conv_r_b": w(ks[4], (HID,)),
        "conv_h_w": w(ks[5], (HID, node_features)), "conv_h_b": w(ks[6], (HID,)),
        "lin_z_w": w(ks[7], (HID, 2 * HID)), "lin_z_b": w(ks[8], (HID,)),
        "lin_r_w": w(ks[9], (HID, 2 * HID)), "lin_r_b": w(ks[10], (HID,)),
        "lin_h_w": w(ks[11], (HID, 2 * HID)), "lin_h_b": w(ks[12], (HID,)),
        "linear_w": w(ks[13], (periods, HID)), "linear_b": w(ks[14], (periods,)),
        "linear2_w": w(ks[15], (N_OUT, N_NODES)), "linear2_b": w(ks[16], (N_OUT,)),
    }


def reference_forward(x, edge_index, params):
    """Pure-JAX replica of AttentionGAT.forward (full torch semantics, incl. r-gate)."""
    B, N, F, T = x.shape
    a_hat = gcn_norm_dense(edge_index, N)
    probs = jax.nn.softmax(params["attention"])
    h_accum = jnp.zeros((B, N, HID), jnp.float32)
    for t in range(T):
        xt = x[..., t]                                                       # (B, N, F)

        def conv(wn, bn):
            y = jnp.einsum("bnf,of->bno", xt, params[wn])
            return jnp.einsum("mn,bno->bmo", a_hat, y) + params[bn]

        cz = conv("conv_z_w", "conv_z_b")
        cr = conv("conv_r_w", "conv_r_b")
        ch = conv("conv_h_w", "conv_h_b")
        h = jnp.zeros((B, N, HID), jnp.float32)                              # H=None -> zeros
        z = jax.nn.sigmoid(jnp.concatenate([cz, h], -1) @ params["lin_z_w"].T + params["lin_z_b"])
        r = jax.nn.sigmoid(jnp.concatenate([cr, h], -1) @ params["lin_r_w"].T + params["lin_r_b"])
        h_tilde = jnp.tanh(jnp.concatenate([ch, h * r], -1) @ params["lin_h_w"].T + params["lin_h_b"])
        h_new = z * h + (1.0 - z) * h_tilde
        h_accum = h_accum + probs[t] * h_new
    h = jax.nn.relu(h_accum)
    h = h @ params["linear_w"].T + params["linear_b"]                        # (B, N, T)
    h = jnp.transpose(h, (0, 2, 1))                                          # (B, T, N)
    h = h @ params["linear2_w"].T + params["linear2_b"]                      # (B, T, 6)
    h = jnp.transpose(h, (0, 2, 1))                                          # (B, 6, T)
    return h


if __name__ == "__main__":
    B, N, F, T = 4, N_NODES, 3, 8   # batch, nodes(=21 for linear2), node_features, periods
    key = jax.random.PRNGKey(0)
    kx, kp = jax.random.split(key)
    x = jax.random.normal(kx, (B, N, F, T), jnp.float32)

    # deterministic symmetric graph on 21 nodes: ring, both directions
    src = np.arange(N)
    dst = (src + 1) % N
    edge_index = jnp.asarray(
        np.stack([np.concatenate([src, dst]), np.concatenate([dst, src])]),
        dtype=jnp.int32)

    params = init_params(kp, F, T)

    out = jax.block_until_ready(attention_gat_forward(x, edge_index, params))

    ref = reference_forward(x, edge_index, params)
    assert out.shape == (B, N_OUT, T)
    np.testing.assert_allclose(np.asarray(out), np.asarray(ref), rtol=2e-2, atol=2e-2)
    print("KERNEL_OK")
</pallas_src>

<mosaic_0001>
module attributes {stable_mosaic.version = 11 : i64} {
  func.func @kernel(%arg0: i32, %arg1: memref<8xf32, #tpu.memory_space<smem>>, %arg2: memref<21x21xf32, #tpu.memory_space<vmem>>, %arg3: memref<3x21x1024xf32, #tpu.memory_space<vmem>>, %arg4: memref<3x1x1024xf32, #tpu.memory_space<vmem>>, %arg5: memref<3x1x1024xf32, #tpu.memory_space<vmem>>, %arg6: memref<1x1024xf32, #tpu.memory_space<vmem>>, %arg7: memref<1x1024xf32, #tpu.memory_space<vmem>>, %arg8: memref<32x8xf32, #tpu.memory_space<vmem>>, %arg9: memref<1x8xf32, #tpu.memory_space<vmem>>, %arg10: memref<6x21xf32, #tpu.memory_space<vmem>>, %arg11: memref<6x1xf32, #tpu.memory_space<vmem>>, %arg12: memref<6x32xf32, #tpu.memory_space<vmem>>) attributes {dimension_semantics = [#tpu.dimension_semantics<arbitrary>], iteration_bounds = array<i64: 1>, scalar_prefetch = 0 : i64, scratch_operands = 0 : i64, tpu.core_type = #tpu.core_type<tc>, window_params = [{transform_indices = @transform_0, window_bounds = array<i64: 8>}, {pipeline_mode = #tpu.pipeline_mode<synchronous>, transform_indices = @transform_1, window_bounds = array<i64: 21, 21>}, {pipeline_mode = #tpu.pipeline_mode<synchronous>, transform_indices = @transform_2, window_bounds = array<i64: 3, 21, 1024>}, {pipeline_mode = #tpu.pipeline_mode<synchronous>, transform_indices = @transform_3, window_bounds = array<i64: 3, 1, 1024>}, {pipeline_mode = #tpu.pipeline_mode<synchronous>, transform_indices = @transform_4, window_bounds = array<i64: 3, 1, 1024>}, {pipeline_mode = #tpu.pipeline_mode<synchronous>, transform_indices = @transform_5, window_bounds = array<i64: 1, 1024>}, {pipeline_mode = #tpu.pipeline_mode<synchronous>, transform_indices = @transform_6, window_bounds = array<i64: 1, 1024>}, {pipeline_mode = #tpu.pipeline_mode<synchronous>, transform_indices = @transform_7, window_bounds = array<i64: 32, 8>}, {pipeline_mode = #tpu.pipeline_mode<synchronous>, transform_indices = @transform_8, window_bounds = array<i64: 1, 8>}, {pipeline_mode = #tpu.pipeline_mode<synchronous>, transform_indices = @transform_9, window_bounds = array<i64: 6, 21>}, {pipeline_mode = #tpu.pipeline_mode<synchronous>, transform_indices = @transform_10, window_bounds = array<i64: 6, 1>}, {pipeline_mode = #tpu.pipeline_mode<synchronous>, transform_indices = @transform_11, window_bounds = array<i64: 6, 32>}]} {
    %c0 = arith.constant 0 : index
    %c0_0 = arith.constant 0 : index
    %c0_1 = arith.constant 0 : index
    %0 = vector.load %arg3[%c0, %c0_0, %c0_1] : memref<3x21x1024xf32, #tpu.memory_space<vmem>>, vector<1x21x1024xf32>
    %1 = vector.shape_cast %0 : vector<1x21x1024xf32> to vector<21x1024xf32>
    %c0_2 = arith.constant 0 : index
    %c0_3 = arith.constant 0 : index
    %c0_4 = arith.constant 0 : index
    %2 = vector.load %arg4[%c0_2, %c0_3, %c0_4] : memref<3x1x1024xf32, #tpu.memory_space<vmem>>, vector<1x1x1024xf32>
    %3 = vector.shape_cast %2 : vector<1x1x1024xf32> to vector<1x1024xf32>
    %4 = vector.broadcast %3 : vector<1x1024xf32> to vector<21x1024xf32>
    %5 = arith.mulf %1, %4 : vector<21x1024xf32>
    %c0_5 = arith.constant 0 : index
    %c0_6 = arith.constant 0 : index
    %c0_7 = arith.constant 0 : index
    %6 = vector.load %arg3[%c0_5, %c0_6, %c0_7] : memref<3x21x1024xf32, #tpu.memory_space<vmem>>, vector<1x21x1024xf32>
    %7 = vector.shape_cast %6 : vector<1x21x1024xf32> to vector<21x1024xf32>
    %c0_8 = arith.constant 0 : index
    %c0_9 = arith.constant 0 : index
    %c0_10 = arith.constant 0 : index
    %8 = vector.load %arg5[%c0_8, %c0_9, %c0_10] : memref<3x1x1024xf32, #tpu.memory_space<vmem>>, vector<1x1x1024xf32>
    %9 = vector.shape_cast %8 : vector<1x1x1024xf32> to vector<1x1024xf32>
    %10 = vector.broadcast %9 : vector<1x1024xf32> to vector<21x1024xf32>
    %11 = arith.mulf %7, %10 : vector<21x1024xf32>
    %c1 = arith.constant 1 : index
    %c0_11 = arith.constant 0 : index
    %c0_12 = arith.constant 0 : index
    %12 = vector.load %arg3[%c1, %c0_11, %c0_12] : memref<3x21x1024xf32, #tpu.memory_space<vmem>>, vector<1x21x1024xf32>
    %13 = vector.shape_cast %12 : vector<1x21x1024xf32> to vector<21x1024xf32>
    %c1_13 = arith.constant 1 : index
    %c0_14 = arith.constant 0 : index
    %c0_15 = arith.constant 0 : index
    %14 = vector.load %arg4[%c1_13, %c0_14, %c0_15] : memref<3x1x1024xf32, #tpu.memory_space<vmem>>, vector<1x1x1024xf32>
    %15 = vector.shape_cast %14 : vector<1x1x1024xf32> to vector<1x1024xf32>
    %16 = vector.broadcast %15 : vector<1x1024xf32> to vector<21x1024xf32>
    %17 = arith.mulf %13, %16 : vector<21x1024xf32>
    %18 = arith.addf %5, %17 : vector<21x1024xf32>
    %c1_16 = arith.constant 1 : index
    %c0_17 = arith.constant 0 : index
    %c0_18 = arith.constant 0 : index
    %19 = vector.load %arg5[%c1_16, %c0_17, %c0_18] : memref<3x1x1024xf32, #tpu.memory_space<vmem>>, vector<1x1x1024xf32>
    %20 = vector.shape_cast %19 : vector<1x1x1024xf32> to vector<1x1024xf32>
    %21 = vector.broadcast %20 : vector<1x1024xf32> to vector<21x1024xf32>
    %22 = arith.mulf %13, %21 : vector<21x1024xf32>
    %23 = arith.addf %11, %22 : vector<21x1024xf32>
    %c2 = arith.constant 2 : index
    %c0_19 = arith.constant 0 : index
    %c0_20 = arith.constant 0 : index
    %24 = vector.load %arg3[%c2, %c0_19, %c0_20] : memref<3x21x1024xf32, #tpu.memory_space<vmem>>, vector<1x21x1024xf32>
    %25 = vector.shape_cast %24 : vector<1x21x1024xf32> to vector<21x1024xf32>
    %c2_21 = arith.constant 2 : index
    %c0_22 = arith.constant 0 : index
    %c0_23 = arith.constant 0 : index
    %26 = vector.load %arg4[%c2_21, %c0_22, %c0_23] : memref<3x1x1024xf32, #tpu.memory_space<vmem>>, vector<1x1x1024xf32>
    %27 = vector.shape_cast %26 : vector<1x1x1024xf32> to vector<1x1024xf32>
    %28 = vector.broadcast %27 : vector<1x1024xf32> to vector<21x1024xf32>
    %29 = arith.mulf %25, %28 : vector<21x1024xf32>
    %30 = arith.addf %18, %29 : vector<21x1024xf32>
    %c2_24 = arith.constant 2 : index
    %c0_25 = arith.constant 0 : index
    %c0_26 = arith.constant 0 : index
    %31 = vector.load %arg5[%c2_24, %c0_25, %c0_26] : memref<3x1x1024xf32, #tpu.memory_space<vmem>>, vector<1x1x1024xf32>
    %32 = vector.shape_cast %31 : vector<1x1x1024xf32> to vector<1x1024xf32>
    %33 = vector.broadcast %32 : vector<1x1024xf32> to vector<21x1024xf32>
    %34 = arith.mulf %25, %33 : vector<21x1024xf32>
    %35 = arith.addf %23, %34 : vector<21x1024xf32>
    %c0_27 = arith.constant 0 : index
    %c0_28 = arith.constant 0 : index
    %36 = vector.load %arg2[%c0_27, %c0_28] : memref<21x21xf32, #tpu.memory_space<vmem>>, vector<21x21xf32>
    %37 = arith.truncf %36 : vector<21x21xf32> to vector<21x21xbf16>
    %38 = arith.truncf %30 : vector<21x1024xf32> to vector<21x1024xbf16>
    %cst = arith.constant dense<0.000000e+00> : vector<21x1024xf32>
    %39 = tpu.matmul %37, %38, %cst {dimension_numbers = #tpu.dot_dimension_numbers<[1], [0], [0], [1], [0, 0, 1, 1], [], []>} : vector<21x21xbf16>, vector<21x1024xbf16>, vector<21x1024xf32> -> vector<21x1024xf32>
    %c0_29 = arith.constant 0 : index
    %c0_30 = arith.constant 0 : index
    %40 = vector.load %arg6[%c0_29, %c0_30] : memref<1x1024xf32, #tpu.memory_space<vmem>>, vector<1x1024xf32>
    %41 = vector.broadcast %40 : vector<1x1024xf32> to vector<21x1024xf32>
    %42 = arith.addf %39, %41 : vector<21x1024xf32>
    %43 = arith.truncf %35 : vector<21x1024xf32> to vector<21x1024xbf16>
    %cst_31 = arith.constant dense<0.000000e+00> : vector<21x1024xf32>
    %44 = tpu.matmul %37, %43, %cst_31 {dimension_numbers = #tpu.dot_dimension_numbers<[1], [0], [0], [1], [0, 0, 1, 1], [], []>} : vector<21x21xbf16>, vector<21x1024xbf16>, vector<21x1024xf32> -> vector<21x1024xf32>
    %c0_32 = arith.constant 0 : index
    %c0_33 = arith.constant 0 : index
    %45 = vector.load %arg7[%c0_32, %c0_33] : memref<1x1024xf32, #tpu.memory_space<vmem>>, vector<1x1024xf32>
    %46 = vector.broadcast %45 : vector<1x1024xf32> to vector<21x1024xf32>
    %47 = arith.addf %44, %46 : vector<21x1024xf32>
    %48 = arith.negf %42 : vector<21x1024xf32>
    %49 = math.exp %48 : vector<21x1024xf32>
    %cst_34 = arith.constant 1.000000e+00 : f32
    %50 = vector.broadcast %cst_34 : f32 to vector<21x1024xf32>
    %51 = arith.addf %50, %49 : vector<21x1024xf32>
    %52 = arith.divf %50, %51 : vector<21x1024xf32>
    %53 = math.tanh %47 : vector<21x1024xf32>
    %cst_35 = arith.constant 1.000000e+00 : f32
    %54 = vector.broadcast %cst_35 : f32 to vector<21x1024xf32>
    %55 = arith.subf %54, %52 : vector<21x1024xf32>
    %56 = arith.mulf %55, %53 : vector<21x1024xf32>
    %c0_36 = arith.constant 0 : index
    %57 = memref.load %arg1[%c0_36] : memref<8xf32, #tpu.memory_space<smem>>
    %58 = vector.extract_strided_slice %56 {offsets = [0, 0], sizes = [21, 128], strides = [1, 1]} : vector<21x1024xf32> to vector<21x128xf32>
    %59 = vector.broadcast %57 : f32 to vector<21x128xf32>
    %60 = arith.mulf %59, %58 : vector<21x128xf32>
    %c1_37 = arith.constant 1 : index
    %61 = memref.load %arg1[%c1_37] : memref<8xf32, #tpu.memory_space<smem>>
    %62 = vector.extract_strided_slice %56 {offsets = [0, 128], sizes = [21, 128], strides = [1, 1]} : vector<21x1024xf32> to vector<21x128xf32>
    %63 = vector.broadcast %61 : f32 to vector<21x128xf32>
    %64 = arith.mulf %63, %62 : vector<21x128xf32>
    %65 = arith.addf %60, %64 : vector<21x128xf32>
    %c2_38 = arith.constant 2 : index
    %66 = memref.load %arg1[%c2_38] : memref<8xf32, #tpu.memory_space<smem>>
    %67 = vector.extract_strided_slice %56 {offsets = [0, 256], sizes = [21, 128], strides = [1, 1]} : vector<21x1024xf32> to vector<21x128xf32>
    %68 = vector.broadcast %66 : f32 to vector<21x128xf32>
    %69 = arith.mulf %68, %67 : vector<21x128xf32>
    %70 = arith.addf %65, %69 : vector<21x128xf32>
    %c3 = arith.constant 3 : index
    %71 = memref.load %arg1[%c3] : memref<8xf32, #tpu.memory_space<smem>>
    %72 = vector.extract_strided_slice %56 {offsets = [0, 384], sizes = [21, 128], strides = [1, 1]} : vector<21x1024xf32> to vector<21x128xf32>
    %73 = vector.broadcast %71 : f32 to vector<21x128xf32>
    %74 = arith.mulf %73, %72 : vector<21x128xf32>
    %75 = arith.addf %70, %74 : vector<21x128xf32>
    %c4 = arith.constant 4 : index
    %76 = memref.load %arg1[%c4] : memref<8xf32, #tpu.memory_space<smem>>
    %77 = vector.extract_strided_slice %56 {offsets = [0, 512], sizes = [21, 128], strides = [1, 1]} : vector<21x1024xf32> to vector<21x128xf32>
    %78 = vector.broadcast %76 : f32 to vector<21x128xf32>
    %79 = arith.mulf %78, %77 : vector<21x128xf32>
    %80 = arith.addf %75, %79 : vector<21x128xf32>
    %c5 = arith.constant 5 : index
    %81 = memref.load %arg1[%c5] : memref<8xf32, #tpu.memory_space<smem>>
    %82 = vector.extract_strided_slice %56 {offsets = [0, 640], sizes = [21, 128], strides = [1, 1]} : vector<21x1024xf32> to vector<21x128xf32>
    %83 = vector.broadcast %81 : f32 to vector<21x128xf32>
    %84 = arith.mulf %83, %82 : vector<21x128xf32>
    %85 = arith.addf %80, %84 : vector<21x128xf32>
    %c6 = arith.constant 6 : index
    %86 = memref.load %arg1[%c6] : memref<8xf32, #tpu.memory_space<smem>>
    %87 = vector.extract_strided_slice %56 {offsets = [0, 768], sizes = [21, 128], strides = [1, 1]} : vector<21x1024xf32> to vector<21x128xf32>
    %88 = vector.broadcast %86 : f32 to vector<21x128xf32>
    %89 = arith.mulf %88, %87 : vector<21x128xf32>
    %90 = arith.addf %85, %89 : vector<21x128xf32>
    %c7 = arith.constant 7 : index
    %91 = memref.load %arg1[%c7] : memref<8xf32, #tpu.memory_space<smem>>
    %92 = vector.extract_strided_slice %56 {offsets = [0, 896], sizes = [21, 128], strides = [1, 1]} : vector<21x1024xf32> to vector<21x128xf32>
    %93 = vector.broadcast %91 : f32 to vector<21x128xf32>
    %94 = arith.mulf %93, %92 : vector<21x128xf32>
    %95 = arith.addf %90, %94 : vector<21x128xf32>
    %cst_39 = arith.constant 0.000000e+00 : f32
    %96 = vector.broadcast %cst_39 : f32 to vector<21x128xf32>
    %97 = arith.maximumf %95, %96 : vector<21x128xf32>
    %c0_40 = arith.constant 0 : index
    %c0_41 = arith.constant 0 : index
    %98 = vector.load %arg8[%c0_40, %c0_41] : memref<32x8xf32, #tpu.memory_space<vmem>>, vector<32x8xf32>
    %c0_42 = arith.constant 0 : index
    %c0_43 = arith.constant 0 : index
    %99 = vector.load %arg9[%c0_42, %c0_43] : memref<1x8xf32, #tpu.memory_space<vmem>>, vector<1x8xf32>
    %c0_44 = arith.constant 0 : index
    %c0_45 = arith.constant 0 : index
    %100 = vector.load %arg10[%c0_44, %c0_45] : memref<6x21xf32, #tpu.memory_space<vmem>>, vector<6x21xf32>
    %c0_46 = arith.constant 0 : index
    %c0_47 = arith.constant 0 : index
    %101 = vector.load %arg11[%c0_46, %c0_47] : memref<6x1xf32, #tpu.memory_space<vmem>>, vector<6x1xf32>
    %102 = vector.extract_strided_slice %97 {offsets = [0, 0], sizes = [21, 32], strides = [1, 1]} : vector<21x128xf32> to vector<21x32xf32>
    %cst_48 = arith.constant dense<0.000000e+00> : vector<21x8xf32>
    %103 = tpu.matmul %102, %98, %cst_48 {dimension_numbers = #tpu.dot_dimension_numbers<[1], [0], [0], [1], [0, 0, 1, 1], [], []>} : vector<21x32xf32>, vector<32x8xf32>, vector<21x8xf32> -> vector<21x8xf32>
    %104 = vector.broadcast %99 : vector<1x8xf32> to vector<21x8xf32>
    %105 = arith.addf %103, %104 : vector<21x8xf32>
    %cst_49 = arith.constant dense<0.000000e+00> : vector<6x8xf32>
    %106 = tpu.matmul %100, %105, %cst_49 {dimension_numbers = #tpu.dot_dimension_numbers<[1], [0], [0], [1], [0, 0, 1, 1], [], []>} : vector<6x21xf32>, vector<21x8xf32>, vector<6x8xf32> -> vector<6x8xf32>
    %107 = vector.broadcast %101 : vector<6x1xf32> to vector<6x8xf32>
    %108 = arith.addf %106, %107 : vector<6x8xf32>
    %c0_50 = arith.constant 0 : index
    %c0_51 = arith.constant 0 : index
    %109 = vector.load %arg12[%c0_50, %c0_51] : memref<6x32xf32, #tpu.memory_space<vmem>>, vector<6x8xf32>
    tpu.vector_store %arg12[%c0_50, %c0_51], %108 {strides = array<i32>} : memref<6x32xf32, #tpu.memory_space<vmem>>, vector<6x8xf32>,
    %110 = vector.extract_strided_slice %97 {offsets = [0, 32], sizes = [21, 32], strides = [1, 1]} : vector<21x128xf32> to vector<21x32xf32>
    %cst_52 = arith.constant dense<0.000000e+00> : vector<21x8xf32>
    %111 = tpu.matmul %110, %98, %cst_52 {dimension_numbers = #tpu.dot_dimension_numbers<[1], [0], [0], [1], [0, 0, 1, 1], [], []>} : vector<21x32xf32>, vector<32x8xf32>, vector<21x8xf32> -> vector<21x8xf32>
    %112 = vector.broadcast %99 : vector<1x8xf32> to vector<21x8xf32>
    %113 = arith.addf %111, %112 : vector<21x8xf32>
    %cst_53 = arith.constant dense<0.000000e+00> : vector<6x8xf32>
    %114 = tpu.matmul %100, %113, %cst_53 {dimension_numbers = #tpu.dot_dimension_numbers<[1], [0], [0], [1], [0, 0, 1, 1], [], []>} : vector<6x21xf32>, vector<21x8xf32>, vector<6x8xf32> -> vector<6x8xf32>
    %115 = vector.broadcast %101 : vector<6x1xf32> to vector<6x8xf32>
    %116 = arith.addf %114, %115 : vector<6x8xf32>
    %c0_54 = arith.constant 0 : index
    %c8 = arith.constant 8 : index
    %117 = vector.load %arg12[%c0_54, %c8] : memref<6x32xf32, #tpu.memory_space<vmem>>, vector<6x8xf32>
    tpu.vector_store %arg12[%c0_54, %c8], %116 {strides = array<i32>} : memref<6x32xf32, #tpu.memory_space<vmem>>, vector<6x8xf32>,
    %118 = vector.extract_strided_slice %97 {offsets = [0, 64], sizes = [21, 32], strides = [1, 1]} : vector<21x128xf32> to vector<21x32xf32>
    %cst_55 = arith.constant dense<0.000000e+00> : vector<21x8xf32>
    %119 = tpu.matmul %118, %98, %cst_55 {dimension_numbers = #tpu.dot_dimension_numbers<[1], [0], [0], [1], [0, 0, 1, 1], [], []>} : vector<21x32xf32>, vector<32x8xf32>, vector<21x8xf32> -> vector<21x8xf32>
    %120 = vector.broadcast %99 : vector<1x8xf32> to vector<21x8xf32>
    %121 = arith.addf %119, %120 : vector<21x8xf32>
    %cst_56 = arith.constant dense<0.000000e+00> : vector<6x8xf32>
    %122 = tpu.matmul %100, %121, %cst_56 {dimension_numbers = #tpu.dot_dimension_numbers<[1], [0], [0], [1], [0, 0, 1, 1], [], []>} : vector<6x21xf32>, vector<21x8xf32>, vector<6x8xf32> -> vector<6x8xf32>
    %123 = vector.broadcast %101 : vector<6x1xf32> to vector<6x8xf32>
    %124 = arith.addf %122, %123 : vector<6x8xf32>
    %c0_57 = arith.constant 0 : index
    %c16 = arith.constant 16 : index
    %125 = vector.load %arg12[%c0_57, %c16] : memref<6x32xf32, #tpu.memory_space<vmem>>, vector<6x8xf32>
    tpu.vector_store %arg12[%c0_57, %c16], %124 {strides = array<i32>} : memref<6x32xf32, #tpu.memory_space<vmem>>, vector<6x8xf32>,
    %126 = vector.extract_strided_slice %97 {offsets = [0, 96], sizes = [21, 32], strides = [1, 1]} : vector<21x128xf32> to vector<21x32xf32>
    %cst_58 = arith.constant dense<0.000000e+00> : vector<21x8xf32>
    %127 = tpu.matmul %126, %98, %cst_58 {dimension_numbers = #tpu.dot_dimension_numbers<[1], [0], [0], [1], [0, 0, 1, 1], [], []>} : vector<21x32xf32>, vector<32x8xf32>, vector<21x8xf32> -> vector<21x8xf32>
    %128 = vector.broadcast %99 : vector<1x8xf32> to vector<21x8xf32>
    %129 = arith.addf %127, %128 : vector<21x8xf32>
    %cst_59 = arith.constant dense<0.000000e+00> : vector<6x8xf32>
    %130 = tpu.matmul %100, %129, %cst_59 {dimension_numbers = #tpu.dot_dimension_numbers<[1], [0], [0], [1], [0, 0, 1, 1], [], []>} : vector<6x21xf32>, vector<21x8xf32>, vector<6x8xf32> -> vector<6x8xf32>
    %131 = vector.broadcast %101 : vector<6x1xf32> to vector<6x8xf32>
    %132 = arith.addf %130, %131 : vector<6x8xf32>
    %c0_60 = arith.constant 0 : index
    %c24 = arith.constant 24 : index
    %133 = vector.load %arg12[%c0_60, %c24] : memref<6x32xf32, #tpu.memory_space<vmem>>, vector<6x8xf32>
    tpu.vector_store %arg12[%c0_60, %c24], %132 {strides = array<i32>} : memref<6x32xf32, #tpu.memory_space<vmem>>, vector<6x8xf32>,
    return
  }
  func.func @transform_0(%arg0: i32) -> i32 {
    %c0_i32 = arith.constant 0 : i32
    %c0_i32_0 = arith.constant 0 : i32
    return %c0_i32 : i32
  }
  func.func @transform_1(%arg0: i32) -> (i32, i32) {
    %c0_i32 = arith.constant 0 : i32
    %c0_i32_0 = arith.constant 0 : i32
    %c0_i32_1 = arith.constant 0 : i32
    return %c0_i32, %c0_i32_0 : i32, i32
  }
  func.func @transform_2(%arg0: i32) -> (i32, i32, i32) {
    %c0_i32 = arith.constant 0 : i32
    %c0_i32_0 = arith.constant 0 : i32
    %c0_i32_1 = arith.constant 0 : i32
    %c0_i32_2 = arith.constant 0 : i32
    return %c0_i32, %c0_i32_0, %c0_i32_1 : i32, i32, i32
  }
  func.func @transform_3(%arg0: i32) -> (i32, i32, i32) {
    %c0_i32 = arith.constant 0 : i32
    %c0_i32_0 = arith.constant 0 : i32
    %c0_i32_1 = arith.constant 0 : i32
    %c0_i32_2 = arith.constant 0 : i32
    return %c0_i32, %c0_i32_0, %c0_i32_1 : i32, i32, i32
  }
  func.func @transform_4(%arg0: i32) -> (i32, i32, i32) {
    %c0_i32 = arith.constant 0 : i32
    %c0_i32_0 = arith.constant 0 : i32
    %c0_i32_1 = arith.constant 0 : i32
    %c0_i32_2 = arith.constant 0 : i32
    return %c0_i32, %c0_i32_0, %c0_i32_1 : i32, i32, i32
  }
  func.func @transform_5(%arg0: i32) -> (i32, i32) {
    %c0_i32 = arith.constant 0 : i32
    %c0_i32_0 = arith.constant 0 : i32
    %c0_i32_1 = arith.constant 0 : i32
    return %c0_i32, %c0_i32_0 : i32, i32
  }
  func.func @transform_6(%arg0: i32) -> (i32, i32) {
    %c0_i32 = arith.constant 0 : i32
    %c0_i32_0 = arith.constant 0 : i32
    %c0_i32_1 = arith.constant 0 : i32
    return %c0_i32, %c0_i32_0 : i32, i32
  }
  func.func @transform_7(%arg0: i32) -> (i32, i32) {
    %c0_i32 = arith.constant 0 : i32
    %c0_i32_0 = arith.constant 0 : i32
    %c0_i32_1 = arith.constant 0 : i32
    return %c0_i32, %c0_i32_0 : i32, i32
  }
  func.func @transform_8(%arg0: i32) -> (i32, i32) {
    %c0_i32 = arith.constant 0 : i32
    %c0_i32_0 = arith.constant 0 : i32
    %c0_i32_1 = arith.constant 0 : i32
    return %c0_i32, %c0_i32_0 : i32, i32
  }
  func.func @transform_9(%arg0: i32) -> (i32, i32) {
    %c0_i32 = arith.constant 0 : i32
    %c0_i32_0 = arith.constant 0 : i32
    %c0_i32_1 = arith.constant 0 : i32
    return %c0_i32, %c0_i32_0 : i32, i32
  }
  func.func @transform_10(%arg0: i32) -> (i32, i32) {
    %c0_i32 = arith.constant 0 : i32
    %c0_i32_0 = arith.constant 0 : i32
    %c0_i32_1 = arith.constant 0 : i32
    return %c0_i32, %c0_i32_0 : i32, i32
  }
  func.func @transform_11(%arg0: i32) -> (i32, i32) {
    %c0_i32 = arith.constant 0 : i32
    %c0_i32_0 = arith.constant 0 : i32
    %c0_i32_1 = arith.constant 0 : i32
    return %c0_i32, %c0_i32_0 : i32, i32
  }
}

</mosaic_0001>

<bundles_post_ra>
// kernel: tile.33
= control target key start
LH: loop header
LB: loop body
LE: loop exit
PB: predicated region body
PF: predicated region fallthrough
CT: control target
= control target key end

     0   :  { %s40_s0 = inlined_call_operand.vmem [shape: f32[32], index: 0, kind: input, shape index: {}]   ;;  %s41_s1 = inlined_call_operand.vmem [shape: f32[32,32], index: 1, kind: output, shape index: {}]  }
   0x1   :  { %v4_v0 = vld [vmem:[%s40_s0] ss:$0 sm:$0xff] }
   0x2   :  { %5 = vst [vmem:[%s41_s1] sm:$0xff] %v4_v0 }
   0x3   :  { %12 = vst [vmem:[%s41_s1 + $0x8] sm:$0xff] %v4_v0 }
   0x4   :  { %13 = vst [vmem:[%s41_s1 + $0x10] sm:$0xff] %v4_v0 }
   0x5   :  { %14 = vst [vmem:[%s41_s1 + $0x18] sm:$0xff] %v4_v0 }

// kernel: tile.34
= control target key start
LH: loop header
LB: loop body
LE: loop exit
PB: predicated region body
PF: predicated region fallthrough
CT: control target
= control target key end

     0   :  { %s88_s8 = smov 96   ;;  %s89_s11 = smov 32   ;;  %vm3_vm0 = vcmask 261120   ;;  %vm10_vm1 = vcmask 1048320   ;;  %vm17_vm2 = vcmask 785920   ;;  %vm24_vm3 = vcmask 523520   ;;  %s137_s0 = inlined_call_operand.vmem [shape: f32[32,32], index: 0, kind: input, shape index: {}]   ;;  %s138_s1 = inlined_call_operand.vmem [shape: f32[1,1024], index: 1, kind: output, shape index: {}]  }
   0x1   :  { %v75_v0 = vld [vmem:[%s137_s0 + $0x3] ss:$4 sm:$0xff]   ;;  %v77_v1 = vld [vmem:[%s137_s0 + $0x1] ss:$4 sm:$0xff]   ;;  %v76_v2 = vld [vmem:[%s137_s0 + $0x2] ss:$4 sm:$0xff]  }
   0x2   :  { %8 = vrot.lane.b32.xlu0 %v75_v0, %s88_s8  ;;  %22 = vrot.lane.b32.xlu1 %v77_v1, %s89_s11  ;;  %s90_s14 = smov 64   ;;  %v2_v3 = vld [vmem:[%s137_s0] ss:$4 sm:$0xff]  }
   0x3   :  { %4 = vst.msk [vmem:[#allocation0] ss:$8 sm:$0xf] %vm3_vm0, %v2_v3  }
   0x4   :  { %5 = vst.msk [vmem:[#allocation0] ss:$8 sm:$0xf0] %vm3_vm0, %v2_v3  }
   0xa   :  { %15 = vrot.lane.b32.xlu0 %v76_v2, %s90_s14 }
  0x74   :  { %v9_v4 = vpop.permute.xlu0 %8   ;;  %v23_v5 = vpop.permute.xlu1 %22  }
  0x75   :  { %11 = vst.msk [vmem:[#allocation0] ss:$8 sm:$0xf] %vm10_vm1, %v9_v4  }
  0x76   :  { %12 = vst.msk [vmem:[#allocation0] ss:$8 sm:$0xf0] %vm10_vm1, %v9_v4  }
  0x7c   :  { %v16_v6 = vpop.permute.xlu0 %15  }
  0x7d   :  { %18 = vst.msk [vmem:[#allocation0] ss:$8 sm:$0xf] %vm17_vm2, %v16_v6  }
  0x7e   :  { %19 = vst.msk [vmem:[#allocation0] ss:$8 sm:$0xf0] %vm17_vm2, %v16_v6  }
  0x7f   :  { %25 = vst.msk [vmem:[#allocation0] ss:$8 sm:$0xf] %vm24_vm3, %v23_v5  }
  0x80   :  { %26 = vst.msk [vmem:[#allocation0] ss:$8 sm:$0xf0] %vm24_vm3, %v23_v5  }
  0x86   :  { %v29_v7 = vld [vmem:[#allocation0] sm:$0x1]  ;;  %v34_v8 = vld [vmem:[#allocation0 + $0x8] sm:$0x1]  ;;  %v40_v9 = vld [vmem:[#allocation0 + $0x10] sm:$0x1] }
  0x87   :  { %32 = vst [vmem:[%s138_s1] sm:$0x1] %v29_v7  ;;  %v46_v10 = vld [vmem:[#allocation0 + $0x18] sm:$0x1]  ;;  %v52_v11 = vld [vmem:[#allocation0 + $0x20] sm:$0x1] }
  0x88   :  { %78 = vst [vmem:[%s138_s1 + $0x1] sm:$0x1] %v34_v8  ;;  %v58_v12 = vld [vmem:[#allocation0 + $0x28] sm:$0x1]  ;;  %v64_v13 = vld [vmem:[#allocation0 + $0x30] sm:$0x1] }
  0x89   :  { %79 = vst [vmem:[%s138_s1 + $0x2] sm:$0x1] %v40_v9  ;;  %v70_v14 = vld [vmem:[#allocation0 + $0x38] sm:$0x1] }
  0x8a   :  { %80 = vst [vmem:[%s138_s1 + $0x3] sm:$0x1] %v46_v10 }
  0x8b   :  { %81 = vst [vmem:[%s138_s1 + $0x4] sm:$0x1] %v52_v11 }
  0x8c   :  { %82 = vst [vmem:[%s138_s1 + $0x5] sm:$0x1] %v58_v12 }
  0x8d   :  { %83 = vst [vmem:[%s138_s1 + $0x6] sm:$0x1] %v64_v13 }
  0x8e   :  { %84 = vst [vmem:[%s138_s1 + $0x7] sm:$0x1] %v70_v14 }

// kernel: attention_gat_forward.1
= control target key start
LH: loop header
LB: loop body
LE: loop exit
PB: predicated region body
PF: predicated region fallthrough
CT: control target
= control target key end

     0   :  { %16 = vsyncpa [#allocation3], 0  ;;  %s2080_s20 = smov [#allocation2]   ;;  %s3990_s0 = inlined_call_operand.vmem [shape: f32[8], index: 0, kind: input, shape index: {}]   ;;  %s3991_s1 = inlined_call_operand.vmem [shape: f32[21,21], index: 1, kind: input, shape index: {}]   ;;  %s3992_s2 = inlined_call_operand.vmem [shape: f32[3,21,1024], index: 2, kind: input, shape index: {}]   ;;  %s3993_s3 = inlined_call_operand.vmem [shape: f32[3,1,1024], index: 3, kind: input, shape index: {}]   ;;  %s3994_s4 = inlined_call_operand.vmem [shape: f32[3,1,1024], index: 4, kind: input, shape index: {}]   ;;  %s3995_s5 = inlined_call_operand.vmem [shape: f32[1,1024], index: 5, kind: input, shape index: {}]   ;;  %s3996_s6 = inlined_call_operand.vmem [shape: f32[1,1024], index: 6, kind: input, shape index: {}]   ;;  %s3997_s7 = inlined_call_operand.vmem [shape: f32[32,8], index: 7, kind: input, shape index: {}]   ;;  %s3998_s8 = inlined_call_operand.vmem [shape: f32[1,8], index: 8, kind: input, shape index: {}]   ;;  %s3999_s9 = inlined_call_operand.vmem [shape: f32[6,21], index: 9, kind: input, shape index: {}]   ;;  %s4000_s10 = inlined_call_operand.vmem [shape: f32[6,1], index: 10, kind: input, shape index: {}]   ;;  %s4001_s11 = inlined_call_operand.vmem [shape: f32[6,32], index: 11, kind: output, shape index: {}]  }
   0x1   :  { %s22_s19 = sshll.u32 %s3990_s0, 4  ;;  %s23_s19 = int_to_ptr.vmem [resolvable:$true] %s22_s19 }
   0x2   :  { %25 = dma.vmem_to_smem %s23_s19, 16, %s2080_s20, [#allocation3]  }
   0x3   :  { %2078 = dma.done.wait [#allocation3], 16  }
   0x4   :  { %2079 = vsyncadd [#allocation3], 4294967280 }
   0x5   :  { %50 = sfence }
   0x6   :  { %v2155_v0 = vld [vmem:[%s3992_s2 + $0x80] sm:$0x1f]  ;;  %v2171_v4 = vld [vmem:[%s3993_s3 + $0x8] sm:$0xff]  ;;  %v2184_v7 = vld [vmem:[%s3993_s3 + $0x10] sm:$0xff]  ;;  %vm524_vm0 = vcmask 1041408   ;;  %vm525_vm1 = vcmask 1042432  }
   0x7   :  { %v2160_v1 = vld [vmem:[%s3993_s3] sm:$0xff]  ;;  %v2174_v5 = vperm.slane %v2171_v4, 0  ;;  %v2188_v9 = vperm.slane %v2184_v7, 0  ;;  %v2195_v11 = vld [vmem:[%s3992_s2 + $0x88] sm:$0x1f]  ;;  %v2081_v15 = vmov 65535  }
   0x8   :  { %v78_v2 = vperm.slane %v2160_v1, 0  ;;  %v2166_v3 = vld [vmem:[%s3992_s2 + $0x140] sm:$0x1f]  ;;  %v2198_v12 = vperm.slane %v2160_v1, 1  ;;  %v526_v16 = vsel %vm524_vm0, 4294967295, %v2081_v15  ;;  %v2215_v20 = vperm.slane %v2171_v4, 1 }
   0x9   :  { %v2179_v6 = vld [vmem:[%s3992_s2 + $0x200] sm:$0x1f]  ;;  %v220_v10 = vmul.f32 %v2166_v3, %v2174_v5  ;;  %v2205_v17 = vld [vmem:[%s3992_s2 + $0x148] sm:$0x1f]  ;;  %v2218_v21 = vperm.slane %v2184_v7, 1  ;;  %v2226_v24 = vperm.slane %v2160_v1, 2 }
   0xa   :  { %v110_v8 = vmul.f32 %v78_v2, %v2155_v0  ;;  %v379_v13 = vmul.f32 %v2179_v6, %v2188_v9  ;;  %v2210_v18 = vld [vmem:[%s3992_s2 + $0x208] sm:$0x1f]  ;;  %v111_v19 = vmul.f32 %v2198_v12, %v2195_v11  ;;  %v2223_v23 = vld [vmem:[%s3992_s2 + $0x90] sm:$0x1f]  ;;  %v2228_v25 = vsel %vm525_vm1, %v526_v16, 0  ;;  %v2273_v44 = vld [vmem:[%s3992_s2] sm:$0xff] }
   0xb   :  { %v221_v26 = vmul.f32 %v2205_v17, %v2215_v20  ;;  %v380_v27 = vmul.f32 %v2210_v18, %v2218_v21  ;;  %v2237_v29 = vld [vmem:[%s3992_s2 + $0x150] sm:$0x1f]  ;;  %v112_v31 = vmul.f32 %v2226_v24, %v2223_v23  ;;  %v2242_v32 = vperm.slane %v2171_v4, 2  ;;  %v2258_v38 = vld [vmem:[%s3992_s2 + $0x98] sm:$0x1f]  ;;  %v2288_v48 = vld [vmem:[%s3992_s2 + $0x40] sm:$0xff] }
   0xc   :  { %v244_v14 = vadd.f32 %v220_v10, %v110_v8  ;;  %v2247_v33 = vld [vmem:[%s3992_s2 + $0x210] sm:$0x1f]  ;;  %v2251_v35 = vperm.slane %v2184_v7, 2  ;;  %v2261_v39 = vperm.slane %v2160_v1, 3  ;;  %v2268_v43 = vld [vmem:[%s3992_s2 + $0x158] sm:$0x1f]  ;;  %v94_v57 = vmul.f32 %v78_v2, %v2273_v44 }
   0xd   :  { %v245_v30 = vadd.f32 %v221_v26, %v111_v19  ;;  %v222_v37 = vmul.f32 %v2237_v29, %v2242_v32  ;;  %v2278_v46 = vperm.slane %v2171_v4, 3  ;;  %v2283_v47 = vld [vmem:[%s3992_s2 + $0x218] sm:$0x1f]  ;;  %v2292_v51 = vperm.slane %v2184_v7, 3  ;;  %v2299_v53 = vld [vmem:[%s3992_s2 + $0xc0] sm:$0xff]  ;;  %v2328_v10 = vld [vmem:[%s3992_s2 + $0x8] sm:$0xff] }
   0xe   :  { %v403_v22 = vadd.f32 %v379_v13, %v244_v14  ;;  %v381_v40 = vmul.f32 %v2247_v33, %v2251_v35  ;;  %v113_v45 = vmul.f32 %v2261_v39, %v2258_v38  ;;  %v2304_v54 = vld [vmem:[%s3992_s2 + $0x100] sm:$0xff]  ;;  %v102_v58 = vmul.f32 %v78_v2, %v2288_v48  ;;  %v2333_v13 = vld [vmem:[%s3992_s2 + $0x48] sm:$0xff]  ;;  %s3291_s29 = sld [smem:[#allocation2 + $0x1]]  ;;  %s2082_s22 = smov 64  }
   0xf   :  { %v404_v36 = vadd.f32 %v380_v27, %v245_v30  ;;  %v246_v42 = vadd.f32 %v222_v37, %v112_v31  ;;  %v223_v52 = vmul.f32 %v2268_v43, %v2278_v46  ;;  %v382_v56 = vmul.f32 %v2283_v47, %v2292_v51  ;;  %v2313_v60 = vld [vmem:[%s3992_s2 + $0x180] sm:$0xff]  ;;  %v2352_v26 = vld [vmem:[%s3994_s4 + $0x8] sm:$0xff]  ;;  %s3313_s30 = sld [smem:[#allocation2 + $0x2]]  ;;  %s2083_s23 = smov 96  }
  0x10   :  { %v491_v28 = vpack.c.bf16 %v403_v22, %v403_v22  ;;  %v2318_v61 = vld [vmem:[%s3992_s2 + $0x1c0] sm:$0xff]  ;;  %v204_v63 = vmul.f32 %v2299_v53, %v2174_v5  ;;  %v212_v8 = vmul.f32 %v2304_v54, %v2174_v5  ;;  %v363_v5 = vmul.f32 %v2313_v60, %v2188_v9  ;;  %v2347_v22 = vld [vmem:[%s3992_s2 + $0xc8] sm:$0xff]  ;;  %4070 = vst [vmem:[#allocation6_spill] sm:$0xff] %v2352_v26  ;;  %s3317_s12 = sld [smem:[#allocation2 + $0x3]]  ;;  %s2084_s24 = smov 32  }
  0x11   :  { %v492_v41 = vpack.c.bf16 %v404_v36, %v404_v36  ;;  %v405_v50 = vadd.f32 %v381_v40, %v246_v42  ;;  %v247_v59 = vadd.f32 %v223_v52, %v113_v45  ;;  %v2338_v14 = vld [vmem:[%s3994_s4] sm:$0xff]  ;;  %v371_v19 = vmul.f32 %v2318_v61, %v2188_v9  ;;  %v2366_v36 = vld [vmem:[%s3992_s2 + $0x188] sm:$0xff]  ;;  %v2387_v45 = vld [vmem:[%s3992_s2 + $0x10] sm:$0xff]  ;;  %s3641_s13 = sld [smem:[#allocation2 + $0x4]]  ;;  %s2086_s27 = smov 8  }
  0x12   :  { %v529_v34 = vand.u32 %v2228_v25, %v491_v28  ;;  %4069 = vst [vmem:[#allocation5_spill] sm:$0xff] %v2338_v14  ;;  %v228_v15 = vadd.f32 %v204_v63, %v94_v57  ;;  %v236_v16 = vadd.f32 %v212_v8, %v102_v58  ;;  %v2357_v28 = vld [vmem:[%s3992_s2 + $0x108] sm:$0xff]  ;;  %v95_v9 = vmul.f32 %v2198_v12, %v2328_v10  ;;  %s3667_s14 = sld [smem:[#allocation2 + $0x5]] }
  0x13   :  { %v532_v49 = vand.u32 %v2228_v25, %v492_v41  ;;  %v493_v55 = vpack.c.bf16 %v405_v50, %v405_v50  ;;  %v406_v2 = vadd.f32 %v382_v56, %v247_v59  ;;  %v2371_v37 = vld [vmem:[%s3992_s2 + $0x1c8] sm:$0xff]  ;;  %v2374_v40 = vperm.slane %v2338_v14, 0  ;;  %v2379_v41 = vld [vmem:[%s3994_s4 + $0x10] sm:$0xff]  ;;  %s3693_s3 = sld [smem:[#allocation2 + $0x6]] }
  0x14   :  { %558 = vmatpush.bf16.msra.mxu0 %v529_v34  ;;  %v387_v30 = vadd.f32 %v363_v5, %v228_v15  ;;  %v395_v31 = vadd.f32 %v371_v19, %v236_v16  ;;  %v103_v34 = vmul.f32 %v2198_v12, %v2333_v13  ;;  %4071 = vst [vmem:[#allocation7_spill] sm:$0xff] %v2379_v41  ;;  %v2395_v50 = vperm.slane %v2352_v26, 0  ;;  %v2402_v56 = vld [vmem:[%s3992_s2 + $0xd0] sm:$0xff] }
  0x15   :  { %576 = vmatpush.bf16.msra.mxu1 %v532_v49  ;;  %v535_v62 = vand.u32 %v2228_v25, %v493_v55  ;;  %v494_v27 = vpack.c.bf16 %v406_v2, %v406_v2  ;;  %v205_v42 = vmul.f32 %v2347_v22, %v2215_v20  ;;  %v2392_v49 = vld [vmem:[%s3992_s2 + $0x50] sm:$0xff]  ;;  %v213_v55 = vmul.f32 %v2357_v28, %v2215_v20 }
  0x16   :  { %v483_v52 = vpack.c.bf16 %v395_v31, %v387_v30  ;;  %v364_v58 = vmul.f32 %v2366_v36, %v2218_v21  ;;  %v372_v59 = vmul.f32 %v2371_v37, %v2218_v21  ;;  %v2414_v20 = vperm.slane %v2379_v41, 0  ;;  %v2423_v21 = vld [vmem:[%s3992_s2 + $0x190] sm:$0xff] }
  0x17   :  { %594 = vmatpush.bf16.msra.mxu2 %v535_v62  ;;  %v538_v12 = vand.u32 %v2228_v25, %v494_v27  ;;  %v229_v57 = vadd.f32 %v205_v42, %v95_v9  ;;  %v2411_v62 = vld [vmem:[%s3992_s2 + $0x110] sm:$0xff]  ;;  %v237_v63 = vadd.f32 %v213_v55, %v103_v34  ;;  %v96_v8 = vmul.f32 %v2226_v24, %v2387_v45  ;;  %v2440_v27 = vld [vmem:[%s3992_s2 + $0x18] sm:$0xff] }
  0x18   :  { %559 = vmatpush.bf16.msra.mxu0 %v483_v52  ;;  %v104_v2 = vmul.f32 %v2226_v24, %v2392_v49  ;;  %v2428_v15 = vld [vmem:[%s3992_s2 + $0x1d0] sm:$0xff]  ;;  %v152_v16 = vmul.f32 %v2374_v40, %v2155_v0  ;;  %v2433_v5 = vperm.slane %v2338_v14, 1  ;;  %v206_v24 = vmul.f32 %v2402_v56, %v2242_v32  ;;  %4073 = vst [vmem:[#allocation9_spill] sm:$0xff] %v2440_v27  ;;  %v2452_v34 = vld [vmem:[%s3992_s2 + $0x58] sm:$0xff] }
  0x19   :  { %612 = vmatpush.bf16.msra.mxu3 %v538_v12  ;;  %4072 = vst [vmem:[#allocation8_spill] sm:$0xff] %v2428_v15  ;;  %v388_v19 = vadd.f32 %v364_v58, %v229_v57  ;;  %v287_v30 = vmul.f32 %v2166_v3, %v2395_v50  ;;  %v2445_v31 = vperm.slane %v2352_v26, 1  ;;  %v396_v9 = vadd.f32 %v372_v59, %v237_v63  ;;  %v2464_v55 = vld [vmem:[%s3992_s2 + $0xd8] sm:$0xff] }
  0x1a   :  { %v214_v0 = vmul.f32 %v2411_v62, %v2242_v32  ;;  %4074 = vst [vmem:[#allocation10_spill] sm:$0xff] %v2452_v34  ;;  %v2455_v12 = vperm.slane %v2338_v14, 2  ;;  %v230_v42 = vadd.f32 %v206_v24, %v96_v8  ;;  %v365_v52 = vmul.f32 %v2423_v21, %v2251_v35  ;;  %v2469_v32 = vld [vmem:[%s3992_s2 + $0x118] sm:$0xff] }
  0x1b   :  { %v373_v3 = vmul.f32 %v2428_v15, %v2251_v35  ;;  %4075 = vst [vmem:[#allocation11_spill] sm:$0xff] %v2464_v55  ;;  %v2473_v57 = vmul.f32 %v2179_v6, %v2414_v20  ;;  %v484_v58 = vpack.c.bf16 %v396_v9, %v388_v19  ;;  %v97_v63 = vmul.f32 %v2261_v39, %v2440_v27  ;;  %v2480_v35 = vld [vmem:[%s3992_s2 + $0x198] sm:$0xff] }
  0x1c   :  { %4076 = vst [vmem:[#allocation12_spill] sm:$0xff] %v2469_v32  ;;  %v238_v59 = vadd.f32 %v214_v0, %v104_v2  ;;  %v2485_v8 = vld [vmem:[%s3992_s2 + $0x1d8] sm:$0xff]  ;;  %v153_v24 = vmul.f32 %v2433_v5, %v2195_v11  ;;  %v2490_v6 = vperm.slane %v2352_v26, 2  ;;  %v389_v2 = vadd.f32 %v365_v52, %v230_v42  ;;  %v478_v11 = vld [vmem:[%s3991_s1] sm:$0xff]  ;;  %v479_v42 = vld [vmem:[%s3991_s1 + $0x8] sm:$0xff] }
  0x1d   :  { %4077 = vst [vmem:[#allocation13_spill] sm:$0xff] %v2480_v35  ;;  %v105_v19 = vmul.f32 %v2261_v39, %v2452_v34  ;;  %v2495_v9 = vperm.slane %v2379_v41, 1  ;;  %577 = vmatpush.bf16.msra.mxu1 %v484_v58  ;;  %v207_v27 = vmul.f32 %v2464_v55, %v2278_v46  ;;  %v215_v15 = vmul.f32 %v2469_v32, %v2278_v46  ;;  %v2521_v34 = vld [vmem:[%s3992_s2 + $0xa0] sm:$0x1f] }
  0x1e   :  { %v397_v0 = vadd.f32 %v373_v3, %v238_v59  ;;  %v288_v39 = vmul.f32 %v2205_v17, %v2445_v31  ;;  %v154_v52 = vmul.f32 %v2455_v12, %v2223_v23  ;;  %v366_v3 = vmul.f32 %v2480_v35, %v2292_v51  ;;  %4078 = vst [vmem:[#allocation14_spill] sm:$0xff] %v2521_v34 }
  0x1f   :  { %v374_v46 = vmul.f32 %v2485_v8, %v2292_v51  ;;  %v2516_v58 = vperm.slane %v2379_v41, 2  ;;  %v231_v32 = vadd.f32 %v207_v27, %v97_v63  ;;  %v239_v55 = vadd.f32 %v215_v15, %v105_v19  ;;  %v2533_v51 = vld [vmem:[%s3992_s2 + $0x160] sm:$0x1f] }
  0x20   :  { %v485_v59 = vpack.c.bf16 %v397_v0, %v389_v2  ;;  %v289_v17 = vmul.f32 %v2237_v29, %v2490_v6  ;;  %v2525_v23 = vpack.c.bf16 %v479_v42, %v478_v11  ;;  %vm517_vm2 = vcmask 171008   ;;  %4079 = vst [vmem:[#allocation15_spill] sm:$0xff] %v2533_v51  ;;  %v2541_v29 = vld [vmem:[%s3992_s2 + $0x220] sm:$0x1f] }
  0x21   :  { %v2528_v35 = vperm.slane %v2160_v1, 4  ;;  %v311_v15 = vadd.f32 %v287_v30, %v152_v16  ;;  %v390_v27 = vadd.f32 %v366_v3, %v231_v32  ;;  %v398_v63 = vadd.f32 %v374_v46, %v239_v55  ;;  %4080 = vst [vmem:[#allocation16_spill] sm:$0xff] %v2541_v29  ;;  %v2561_v55 = vld [vmem:[%s3992_s2 + $0xa8] sm:$0x1f] }
  0x22   :  { %595 = vmatpush.bf16.msra.mxu2 %v485_v59  ;;  %v2536_v2 = vperm.slane %v2171_v4, 4  ;;  %v2544_v19 = vperm.slane %v2338_v14, 3  ;;  %v2547_v0 = vperm.slane %v2352_v26, 3  ;;  %1828 = vmatmul.msk.bf16.vlgmr.msra.gmra.mxu0 %vm517_vm2, %v2525_v23  ;;  %v2556_v30 = vperm.slane %v2184_v7, 4  ;;  %4081 = vst [vmem:[#allocation17_spill] sm:$0xff] %v2561_v55 }
  0x23   :  { %1830 = vmatmul.msk.bf16.vlgmr.msra.gmra.mxu1 %vm517_vm2, %v2525_v23  ;;  %v114_v16 = vmul.f32 %v2528_v35, %v2521_v34  ;;  %v447_v32 = vmul.f32 %v2210_v18, %v2495_v9  ;;  %v486_v11 = vpack.c.bf16 %v398_v63, %v390_v27  ;;  %v2568_v3 = vperm.slane %v2160_v1, 5  ;;  %v2579_v18 = vld [vmem:[%s3992_s2 + $0x168] sm:$0x1f] }
  0x24   :  { %v224_v42 = vmul.f32 %v2533_v51, %v2536_v2  ;;  %v312_v46 = vadd.f32 %v288_v39, %v153_v24  ;;  %v313_v59 = vadd.f32 %v289_v17, %v154_v52  ;;  %v448_v34 = vmul.f32 %v2247_v33, %v2516_v58  ;;  %4082 = vst [vmem:[#allocation18_spill] sm:$0xff] %v2579_v18  ;;  %v2592_v52 = vld [vmem:[%s3992_s2 + $0x228] sm:$0x1f]  ;;  %v2597_v17 = vld [vmem:[%s3992_s2 + $0xb0] sm:$0x1f] }
  0x25   :  { %1832 = vmatmul.msk.bf16.vlgmr.msra.gmra.mxu2 %vm517_vm2, %v2525_v23  ;;  %v383_v26 = vmul.f32 %v2541_v29, %v2556_v30  ;;  %v2582_v27 = vperm.slane %v2379_v41, 3  ;;  %613 = vmatpush.bf16.msra.mxu3 %v486_v11  ;;  %v115_v39 = vmul.f32 %v2568_v3, %v2561_v55  ;;  %v2587_v33 = vperm.slane %v2171_v4, 5  ;;  %4083 = vst [vmem:[#allocation19_spill] sm:$0xff] %v2592_v52 }
  0x26   :  { %v248_v24 = vadd.f32 %v224_v42, %v114_v16  ;;  %4084 = vst [vmem:[#allocation20_spill] sm:$0xff] %v2597_v17  ;;  %v155_v63 = vmul.f32 %v2544_v19, %v2258_v38  ;;  %v290_v16 = vmul.f32 %v2268_v43, %v2547_v0  ;;  %v2604_v11 = vperm.slane %v2184_v7, 5  ;;  %v2617_v38 = vld [vmem:[%s3992_s2 + $0x170] sm:$0x1f] }
  0x27   :  { %v2607_v42 = vperm.slane %v2160_v1, 6  ;;  %v2610_v55 = vadd.f32 %v2473_v57, %v311_v15  ;;  %v225_v51 = vmul.f32 %v2579_v18, %v2587_v33  ;;  %4086 = vst [vmem:[#allocation22_spill] sm:$0xff] %v2617_v38  ;;  %v2619_v41 = vadd.f32 %v447_v32, %v312_v46  ;;  %v2637_v46 = vld [vmem:[%s3992_s2 + $0x230] sm:$0x1f] }
  0x28   :  { %v407_v29 = vadd.f32 %v383_v26, %v248_v24  ;;  %1834 = vmatmul.msk.bf16.vlgmr.msra.gmra.mxu3 %vm517_vm2, %v2525_v23  ;;  %v384_v43 = vmul.f32 %v2592_v52, %v2604_v11  ;;  %v2628_v26 = vperm.slane %v2171_v4, 6  ;;  %v2630_v15 = vadd.f32 %v448_v34, %v313_v59  ;;  %4088 = vst [vmem:[#allocation24_spill] sm:$0xff] %v2637_v46  ;;  %v2647_v34 = vld [vmem:[%s3992_s2 + $0xb8] sm:$0x1f] }
  0x29   :  { %4085 = vst [vmem:[#allocation21_spill] sm:$0xff] %v2610_v55  ;;  %v116_v57 = vmul.f32 %v2607_v42, %v2597_v17  ;;  %v449_v24 = vmul.f32 %v2283_v47, %v2582_v27  ;;  %v249_v32 = vadd.f32 %v225_v51, %v115_v39  ;;  %v314_v14 = vadd.f32 %v290_v16, %v155_v63  ;;  %v480_v51 = vld [vmem:[%s3991_s1 + $0x10] sm:$0x1f]  ;;  %v2687_v39 = vld [vmem:[%s3992_s2 + $0x238] sm:$0x1f] }
  0x2a   :  { %4087 = vst [vmem:[#allocation23_spill] sm:$0xff] %v2619_v41  ;;  %v495_v18 = vpack.c.bf16 %v407_v29, %v407_v29  ;;  %v226_v52 = vmul.f32 %v2617_v38, %v2628_v26  ;;  %v2642_v17 = vperm.slane %v2184_v7, 6  ;;  %v2650_v47 = vperm.slane %v2160_v1, 7  ;;  %v2665_v1 = vld [vmem:[%s3992_s2 + $0x178] sm:$0x1f] }
  0x2b   :  { %v408_v59 = vadd.f32 %v384_v43, %v249_v32  ;;  %4089 = vst [vmem:[#allocation25_spill] sm:$0xff] %v2665_v1  ;;  %v2675_v43 = vld [vmem:[%s3992_s2 + $0x60] sm:$0xff]  ;;  %v2682_v63 = vperm.slane %v2171_v4, 7  ;;  %v2691_v41 = vpack.c.bf16 %v480_v51, %v480_v51  ;;  %v2719_v51 = vmul.f32 %v2374_v40, %v2288_v48 }
  0x2c   :  { %v541_v29 = vand.u32 %v2228_v25, %v495_v18  ;;  %v250_v16 = vadd.f32 %v226_v52, %v116_v57  ;;  %v385_v38 = vmul.f32 %v2637_v46, %v2642_v17  ;;  %v2670_v18 = vld [vmem:[%s3992_s2 + $0x20] sm:$0xff]  ;;  %4090 = vst [vmem:[#allocation26_spill] sm:$0xff] %v2675_v43  ;;  %v117_v32 = vmul.f32 %v2650_v47, %v2647_v34 }
  0x2d   :  { %v496_v57 = vpack.c.bf16 %v408_v59, %v408_v59  ;;  %v2689_v46 = vadd.f32 %v449_v24, %v314_v14  ;;  %v2694_v52 = vperm.slane %v2184_v7, 7  ;;  %v2704_v4 = vld [vmem:[%s3992_s2 + $0x120] sm:$0xff]  ;;  %v227_v14 = vmul.f32 %v2665_v1, %v2682_v63 }
  0x2e   :  { %630 = vmatpush.bf16.msrb.mxu0 %v541_v29  ;;  %v409_v55 = vadd.f32 %v385_v38, %v250_v16  ;;  %v2699_v29 = vld [vmem:[%s3992_s2 + $0xe0] sm:$0xff]  ;;  %4092 = vst [vmem:[#allocation28_spill] sm:$0xff] %v2704_v4  ;;  %v98_v38 = vmul.f32 %v2528_v35, %v2670_v18  ;;  %v106_v7 = vmul.f32 %v2528_v35, %v2675_v43 }
  0x2f   :  { %4091 = vst [vmem:[#allocation27_spill] sm:$0xff] %v2699_v29  ;;  %v544_v59 = vand.u32 %v2228_v25, %v496_v57  ;;  %v2715_v24 = vmul.f32 %v2374_v40, %v2273_v44  ;;  %v386_v57 = vmul.f32 %v2687_v39, %v2694_v52  ;;  %v2726_v1 = vld [vmem:[%s3992_s2 + $0x1a0] sm:$0xff]  ;;  %v2730_v35 = vmul.f32 %v2299_v53, %v2395_v50 }
  0x30   :  { %v497_v16 = vpack.c.bf16 %v409_v55, %v409_v55  ;;  %v251_v44 = vadd.f32 %v227_v14, %v117_v32  ;;  %v208_v43 = vmul.f32 %v2699_v29, %v2536_v2  ;;  %v216_v48 = vmul.f32 %v2704_v4, %v2536_v2  ;;  %v2739_v40 = vld [vmem:[%s3992_s2 + $0x1e0] sm:$0xff]  ;;  %v2744_v55 = vld [vmem:[%s3992_s2 + $0x28] sm:$0xff] }
  0x31   :  { %648 = vmatpush.bf16.msrb.mxu1 %v544_v59  ;;  %4093 = vst [vmem:[#allocation29_spill] sm:$0xff] %v2744_v55  ;;  %v2750_v32 = vmul.f32 %v2304_v54, %v2395_v50  ;;  %v2760_v59 = vld [vmem:[%s3992_s2 + $0x68] sm:$0xff]  ;;  %v367_v54 = vmul.f32 %v2726_v1, %v2556_v30  ;;  %v2776_v29 = vmul.f32 %v2313_v60, %v2414_v20 }
  0x32   :  { %1829 = vmatmul.msk.bf16.gmra.mxu0 %vm517_vm2, %v2691_v41  ;;  %v547_v2 = vand.u32 %v2228_v25, %v497_v16  ;;  %v410_v14 = vadd.f32 %v386_v57, %v251_v44  ;;  %v232_v4 = vadd.f32 %v208_v43, %v98_v38  ;;  %v240_v53 = vadd.f32 %v216_v48, %v106_v7  ;;  %v2767_v50 = vld [vmem:[%s3992_s2 + $0xe8] sm:$0xff] }
  0x33   :  { %1831 = vmatmul.msk.bf16.gmra.mxu1 %vm517_vm2, %v2691_v41  ;;  %v2772_v16 = vld [vmem:[%s3992_s2 + $0x128] sm:$0xff]  ;;  %v2780_v43 = vmul.f32 %v2318_v61, %v2414_v20  ;;  %v375_v38 = vmul.f32 %v2739_v40, %v2556_v30  ;;  %v99_v7 = vmul.f32 %v2568_v3, %v2744_v55  ;;  %v2795_v60 = vmul.f32 %v2433_v5, %v2328_v10 }
  0x34   :  { %4094 = vst [vmem:[#allocation30_spill] sm:$0xff] %v2772_v16  ;;  %v2791_v57 = vld [vmem:[%s3992_s2 + $0x1a8] sm:$0xff]  ;;  %666 = vmatpush.bf16.msrb.mxu2 %v547_v2  ;;  %v498_v61 = vpack.c.bf16 %v410_v14, %v410_v14  ;;  %v391_v20 = vadd.f32 %v367_v54, %v232_v4  ;;  %v107_v44 = vmul.f32 %v2568_v3, %v2760_v59  ;;  %v2815_v3 = vld [vmem:[%s3992_s2 + $0x30] sm:$0xff] }
  0x35   :  { %1833 = vmatmul.msk.bf16.gmra.mxu2 %vm517_vm2, %v2691_v41  ;;  %v2802_v30 = vld [vmem:[%s3992_s2 + $0x1e8] sm:$0xff]  ;;  %v2806_v48 = vmul.f32 %v2433_v5, %v2333_v13  ;;  %v399_v55 = vadd.f32 %v375_v38, %v240_v53  ;;  %v209_v10 = vmul.f32 %v2767_v50, %v2587_v33  ;;  %v217_v2 = vmul.f32 %v2772_v16, %v2587_v33  ;;  %v2820_v4 = vld [vmem:[%s3992_s2 + $0x70] sm:$0xff] }
  0x36   :  { %4095 = vst [vmem:[#allocation31_spill] sm:$0xff] %v2820_v4  ;;  %v2824_v13 = vmul.f32 %v2347_v22, %v2445_v31  ;;  %v2828_v5 = vmul.f32 %v2357_v28, %v2445_v31  ;;  %v550_v33 = vand.u32 %v2228_v25, %v498_v61  ;;  %v368_v53 = vmul.f32 %v2791_v57, %v2604_v11  ;;  %v2840_v22 = vld [vmem:[%s3992_s2 + $0xf0] sm:$0xff] }
  0x37   :  { %v487_v14 = vpack.c.bf16 %v399_v55, %v391_v20  ;;  %v233_v54 = vadd.f32 %v209_v10, %v99_v7  ;;  %v241_v38 = vadd.f32 %v217_v2, %v107_v44  ;;  %v376_v16 = vmul.f32 %v2802_v30, %v2604_v11  ;;  %4096 = vst [vmem:[#allocation32_spill] sm:$0xff] %v2840_v22  ;;  %v2845_v28 = vld [vmem:[%s3992_s2 + $0x130] sm:$0xff] }
  0x38   :  { %1835 = vmatmul.msk.bf16.gmra.mxu3 %vm517_vm2, %v2691_v41  ;;  %4097 = vst [vmem:[#allocation33_spill] sm:$0xff] %v2845_v28  ;;  %v2849_v31 = vmul.f32 %v2366_v36, %v2495_v9  ;;  %v2853_v55 = vmul.f32 %v2371_v37, %v2495_v9  ;;  %v100_v11 = vmul.f32 %v2607_v42, %v2815_v3  ;;  %v2862_v61 = vld [vmem:[%s3992_s2 + $0x1b0] sm:$0xff] }
  0x39   :  { %684 = vmatpush.bf16.msrb.mxu3 %v550_v33  ;;  %v108_v7 = vmul.f32 %v2607_v42, %v2820_v4  ;;  %4098 = vst [vmem:[#allocation34_spill] sm:$0xff] %v2862_v61  ;;  %v2867_v36 = vld [vmem:[%s3992_s2 + $0x1f0] sm:$0xff]  ;;  %v138_v37 = vmul.f32 %v2455_v12, %v2387_v45  ;;  %v146_v9 = vmul.f32 %v2455_v12, %v2392_v49  ;;  %v2876_v42 = vld [vmem:[%s3992_s2 + $0x38] sm:$0xff] }
  0x3a   :  { %4099 = vst [vmem:[#allocation35_spill] sm:$0xff] %v2867_v36  ;;  %631 = vmatpush.bf16.msrb.mxu0 %v487_v14  ;;  %v392_v20 = vadd.f32 %v368_v53, %v233_v54  ;;  %v400_v44 = vadd.f32 %v376_v16, %v241_v38  ;;  %v273_v10 = vmul.f32 %v2402_v56, %v2490_v6  ;;  %v2889_v12 = vld [vmem:[%s3992_s2 + $0x78] sm:$0xff] }
  0x3b   :  { %4100 = vst [vmem:[#allocation36_spill] sm:$0xff] %v2876_v42  ;;  %v281_v2 = vmul.f32 %v2411_v62, %v2490_v6  ;;  %v210_v45 = vmul.f32 %v2840_v22, %v2628_v26  ;;  %v218_v49 = vmul.f32 %v2845_v28, %v2628_v26  ;;  %v2894_v16 = vld [vmem:[%s3992_s2 + $0xf8] sm:$0xff]  ;;  %v432_v56 = vmul.f32 %v2423_v21, %v2516_v58 }
  0x3c   :  { %v488_v62 = vpack.c.bf16 %v400_v44, %v392_v20  ;;  %v369_v6 = vmul.f32 %v2862_v61, %v2642_v17  ;;  %v377_v26 = vmul.f32 %v2867_v36, %v2642_v17  ;;  %v2905_v33 = vld [vmem:[%s3992_s2 + $0x138] sm:$0xff]  ;;  %v101_v21 = vmul.f32 %v2650_v47, %v2876_v42  ;;  %v4102_v44 = vld [vmem:[#allocation9_spill] sm:$0xff]  ;;  %v4103_v61 = vld [vmem:[#allocation10_spill] sm:$0xff] }
  0x3d   :  { %v4101_v53 = vld [vmem:[#allocation8_spill] sm:$0xff]  ;;  %v234_v54 = vadd.f32 %v210_v45, %v100_v11  ;;  %v242_v38 = vadd.f32 %v218_v49, %v108_v7  ;;  %v139_v36 = vmul.f32 %v2544_v19, %v4102_v44  ;;  %v109_v11 = vmul.f32 %v2650_v47, %v2889_v12  ;;  %v4104_v45 = vld [vmem:[#allocation11_spill] sm:$0xff] }
  0x3e   :  { %v440_v14 = vmul.f32 %v4101_v53, %v2516_v58  ;;  %v2914_v20 = vld [vmem:[%s3992_s2 + $0x1b8] sm:$0xff]  ;;  %v147_v58 = vmul.f32 %v2544_v19, %v4103_v61  ;;  %649 = vmatpush.bf16.msrb.mxu1 %v488_v62  ;;  %v211_v7 = vmul.f32 %v2894_v16, %v2682_v63  ;;  %v274_v49 = vmul.f32 %v4104_v45, %v2547_v0  ;;  %v4106_v61 = vld [vmem:[#allocation13_spill] sm:$0xff] }
  0x3f   :  { %v2919_v17 = vld [vmem:[%s3992_s2 + $0x1f8] sm:$0xff]  ;;  %v393_v53 = vadd.f32 %v369_v6, %v234_v54  ;;  %v401_v42 = vadd.f32 %v377_v26, %v242_v38  ;;  %v219_v28 = vmul.f32 %v2905_v33, %v2682_v63  ;;  %v370_v19 = vmul.f32 %v2914_v20, %v2694_v52 }
  0x40   :  { %v4105_v44 = vld [vmem:[#allocation12_spill] sm:$0xff]  ;;  %v235_v4 = vadd.f32 %v211_v7, %v101_v21  ;;  %v378_v47 = vmul.f32 %v2919_v17, %v2694_v52  ;;  %v433_v62 = vmul.f32 %v4106_v61, %v2582_v27  ;;  %v441_v6 = vmul.f32 %v2485_v8, %v2582_v27  ;;  %v4109_v21 = vld [vmem:[#allocation23_spill] sm:$0xff] }
  0x41   :  { %v282_v22 = vmul.f32 %v4105_v44, %v2547_v0  ;;  %v489_v26 = vpack.c.bf16 %v401_v42, %v393_v53  ;;  %v243_v54 = vadd.f32 %v219_v28, %v109_v11  ;;  %v4107_v0 = vld [vmem:[#allocation21_spill] sm:$0xff]  ;;  %v4110_v7 = vpack.c.bf16 %v4109_v21, %v4109_v21  ;;  %v4117_v21 = vld [vmem:[#allocation15_spill] sm:$0xff] }
  0x42   :  { %v394_v38 = vadd.f32 %v370_v19, %v235_v4  ;;  %1836 = vmatmul.msk.bf16.vlgmr.msrb.gmra.mxu0 %vm517_vm2, %v2525_v23  ;;  %v4108_v63 = vpack.c.bf16 %v4107_v0, %v4107_v0  ;;  %v4111_v27 = vpack.c.bf16 %v2630_v15, %v2630_v15  ;;  %v4112_v28 = vpack.c.bf16 %v2689_v46, %v2689_v46 }
  0x43   :  { %1838 = vmatmul.msk.bf16.vlgmr.msrb.gmra.mxu1 %vm517_vm2, %v2525_v23  ;;  %v734_v45 = vand.u32 %v4110_v7, %v2228_v25  ;;  %667 = vmatpush.bf16.msrb.mxu2 %v489_v26  ;;  %v402_v8 = vadd.f32 %v378_v47, %v243_v54  ;;  %v295_v11 = vadd.f32 %v2730_v35, %v2715_v24 }
  0x44   :  { %v731_v52 = vand.u32 %v4108_v63, %v2228_v25  ;;  %v737_v4 = vand.u32 %v4111_v27, %v2228_v25  ;;  %v740_v42 = vand.u32 %v4112_v28, %v2228_v25  ;;  %v303_v53 = vadd.f32 %v2750_v32, %v2719_v51  ;;  %v4116_v63 = vld [vmem:[#allocation14_spill] sm:$0xff]  ;;  %v4119_v27 = vld [vmem:[#allocation17_spill] sm:$0xff] }
  0x45   :  { %778 = vmatpush.bf16.msra.mxu1 %v734_v45  ;;  %v296_v44 = vadd.f32 %v2824_v13, %v2795_v60  ;;  %v304_v15 = vadd.f32 %v2828_v5, %v2806_v48  ;;  %v490_v19 = vpack.c.bf16 %v402_v8, %v394_v38  ;;  %v454_v47 = vadd.f32 %v2776_v29, %v295_v11  ;;  %v4118_v45 = vld [vmem:[#allocation16_spill] sm:$0xff]  ;;  %v4120_v28 = vld [vmem:[#allocation18_spill] sm:$0xff]  ;;  %v4121_v11 = vld [vmem:[#allocation19_spill] sm:$0xff] }
  0x46   :  { %760 = vmatpush.bf16.msra.mxu0 %v731_v52  ;;  %v297_v46 = vadd.f32 %v273_v10, %v138_v37  ;;  %v305_v61 = vadd.f32 %v281_v2, %v146_v9  ;;  %1840 = vmatmul.msk.bf16.vlgmr.msrb.gmra.mxu2 %vm517_vm2, %v2525_v23  ;;  %v462_v24 = vadd.f32 %v2780_v43, %v303_v53  ;;  %v4115_v2 = vld [vmem:[#allocation7_spill] sm:$0xff] }
  0x47   :  { %796 = vmatpush.bf16.msra.mxu2 %v737_v4  ;;  %v455_v35 = vadd.f32 %v2849_v31, %v296_v44  ;;  %v463_v51 = vadd.f32 %v2853_v55, %v304_v15  ;;  %v298_v32 = vadd.f32 %v274_v49, %v139_v36  ;;  %685 = vmatpush.bf16.msrb.mxu3 %v490_v19  ;;  %v4113_v31 = vld [vmem:[#allocation5_spill] sm:$0xff]  ;;  %v4114_v36 = vld [vmem:[#allocation6_spill] sm:$0xff]  ;;  %v421_v0 = vperm.slane %v4115_v2, 7  ;;  %v4122_v44 = vld [vmem:[#allocation20_spill] sm:$0xff] }
  0x48   :  { %v456_v60 = vadd.f32 %v432_v56, %v297_v46  ;;  %v464_v13 = vadd.f32 %v440_v14, %v305_v61  ;;  %v306_v48 = vadd.f32 %v282_v22, %v147_v58  ;;  %v696_v5 = vpack.c.bf16 %v462_v24, %v454_v47  ;;  %v4123_v19 = vld [vmem:[#allocation22_spill] sm:$0xff]  ;;  %v4124_v46 = vld [vmem:[#allocation24_spill] sm:$0xff] }
  0x49   :  { %v697_v26 = vpack.c.bf16 %v463_v51, %v455_v35  ;;  %v457_v29 = vadd.f32 %v433_v62, %v298_v32  ;;  %v124_v55 = vperm.slane %v4113_v31, 4  ;;  %v259_v10 = vperm.slane %v4114_v36, 4  ;;  %v4125_v35 = vld [vmem:[#allocation25_spill] sm:$0xff] }
  0x4a   :  { %v698_v37 = vpack.c.bf16 %v464_v13, %v456_v60  ;;  %v465_v9 = vadd.f32 %v441_v6, %v306_v48  ;;  %1842 = vmatmul.msk.bf16.vlgmr.msrb.gmra.mxu3 %vm517_vm2, %v2525_v23  ;;  %761 = vmatpush.bf16.msra.mxu0 %v696_v5  ;;  %v418_v56 = vperm.slane %v4115_v2, 4  ;;  %v125_v22 = vperm.slane %v4113_v31, 5  ;;  %v4126_v13 = vld [vmem:[#allocation26_spill] sm:$0xff]  ;;  %v4127_v5 = vld [vmem:[#allocation27_spill] sm:$0xff] }
  0x4b   :  { %814 = vmatpush.bf16.msra.mxu3 %v740_v42  ;;  %779 = vmatpush.bf16.msra.mxu1 %v697_v26  ;;  %v260_v14 = vperm.slane %v4114_v36, 5  ;;  %v419_v58 = vperm.slane %v4115_v2, 5  ;;  %v126_v49 = vperm.slane %v4113_v31, 6  ;;  %v261_v62 = vperm.slane %v4114_v36, 6 }
  0x4c   :  { %797 = vmatpush.bf16.msra.mxu2 %v698_v37  ;;  %v699_v43 = vpack.c.bf16 %v465_v9, %v457_v29  ;;  %v420_v6 = vperm.slane %v4115_v2, 6  ;;  %v127_v54 = vperm.slane %v4113_v31, 7  ;;  %v262_v38 = vperm.slane %v4114_v36, 7  ;;  %v4128_v29 = vld [vmem:[#allocation28_spill] sm:$0xff]  ;;  %v4129_v31 = vld [vmem:[#allocation29_spill] sm:$0xff] }
  0x4d   :  { %v156_v52 = vmul.f32 %v124_v55, %v4116_v63  ;;  %v291_v7 = vmul.f32 %v4117_v21, %v259_v10  ;;  %v450_v8 = vmul.f32 %v4118_v45, %v418_v56  ;;  %v157_v4 = vmul.f32 %v125_v22, %v4119_v27  ;;  %v4130_v63 = vld [vmem:[#allocation30_spill] sm:$0xff]  ;;  %v4133_v45 = vld [vmem:[#allocation33_spill] sm:$0xff] }
  0x4e   :  { %v292_v42 = vmul.f32 %v4120_v28, %v260_v14  ;;  %v451_v53 = vmul.f32 %v4121_v11, %v419_v58  ;;  %v158_v15 = vmul.f32 %v126_v49, %v4122_v44  ;;  %v293_v47 = vmul.f32 %v4123_v19, %v261_v62 }
  0x4f   :  { %815 = vmatpush.bf16.msra.mxu3 %v699_v43  ;;  %v452_v61 = vmul.f32 %v4124_v46, %v420_v6  ;;  %v159_v24 = vmul.f32 %v127_v54, %v2647_v34  ;;  %v294_v51 = vmul.f32 %v4125_v35, %v262_v38  ;;  %v453_v32 = vmul.f32 %v2687_v39, %v421_v0 }
  0x50   :  { %v140_v60 = vmul.f32 %v124_v55, %v2670_v18  ;;  %v148_v48 = vmul.f32 %v124_v55, %v4126_v13  ;;  %v275_v26 = vmul.f32 %v4127_v5, %v259_v10  ;;  %v283_v37 = vmul.f32 %v4128_v29, %v259_v10 }
  0x51   :  { %v434_v9 = vmul.f32 %v2726_v1, %v418_v56  ;;  %v442_v43 = vmul.f32 %v2739_v40, %v418_v56  ;;  %v141_v36 = vmul.f32 %v125_v22, %v4129_v31  ;;  %v149_v34 = vmul.f32 %v125_v22, %v2760_v59  ;;  %v4131_v1 = vld [vmem:[#allocation31_spill] sm:$0xff]  ;;  %v4132_v40 = vld [vmem:[#allocation32_spill] sm:$0xff]  ;;  %v4134_v59 = vld [vmem:[#allocation34_spill] sm:$0xff] }
  0x52   :  { %1837 = vmatmul.msk.bf16.gmra.mxu0 %vm517_vm2, %v2691_v41  ;;  %v276_v2 = vmul.f32 %v2767_v50, %v260_v14  ;;  %v284_v39 = vmul.f32 %v4130_v63, %v260_v14  ;;  %v435_v18 = vmul.f32 %v2791_v57, %v419_v58  ;;  %v443_v55 = vmul.f32 %v2802_v30, %v419_v58  ;;  %v4135_v50 = vld [vmem:[#allocation35_spill] sm:$0xff]  ;;  %v4136_v14 = vld [vmem:[#allocation36_spill] sm:$0xff] }
  0x53   :  { %1839 = vmatmul.msk.bf16.gmra.mxu1 %vm517_vm2, %v2691_v41  ;;  %v142_v10 = vmul.f32 %v126_v49, %v2815_v3  ;;  %v150_v21 = vmul.f32 %v126_v49, %v4131_v1  ;;  %v277_v56 = vmul.f32 %v4132_v40, %v261_v62  ;;  %v285_v27 = vmul.f32 %v4133_v45, %v261_v62 }
  0x54   :  { %v436_v22 = vmul.f32 %v4134_v59, %v420_v6  ;;  %v444_v28 = vmul.f32 %v4135_v50, %v420_v6  ;;  %v143_v11 = vmul.f32 %v127_v54, %v4136_v14  ;;  %v151_v44 = vmul.f32 %v127_v54, %v2889_v12 }
  0x55   :  { %v278_v57 = vmul.f32 %v2894_v16, %v262_v38  ;;  %v286_v30 = vmul.f32 %v2905_v33, %v262_v38  ;;  %v315_v3 = vadd.f32 %v291_v7, %v156_v52  ;;  %v316_v58 = vadd.f32 %v292_v42, %v157_v4 }
  0x56   :  { %1841 = vmatmul.msk.bf16.gmra.mxu2 %vm517_vm2, %v2691_v41  ;;  %v317_v49 = vadd.f32 %v293_v47, %v158_v15  ;;  %v318_v19 = vadd.f32 %v294_v51, %v159_v24  ;;  %v299_v62 = vadd.f32 %v275_v26, %v140_v60  ;;  %v307_v46 = vadd.f32 %v283_v37, %v148_v48 }
  0x57   :  { %v300_v35 = vadd.f32 %v276_v2, %v141_v36  ;;  %v308_v13 = vadd.f32 %v284_v39, %v149_v34  ;;  %v474_v6 = vadd.f32 %v450_v8, %v315_v3  ;;  %v475_v5 = vadd.f32 %v451_v53, %v316_v58 }
  0x58   :  { %v476_v29 = vadd.f32 %v452_v61, %v317_v49  ;;  %v477_v31 = vadd.f32 %v453_v32, %v318_v19  ;;  %v437_v12 = vmul.f32 %v2914_v20, %v421_v0  ;;  %v445_v16 = vmul.f32 %v2919_v17, %v421_v0 }
  0x59   :  { %v458_v33 = vadd.f32 %v434_v9, %v299_v62  ;;  %v466_v54 = vadd.f32 %v442_v43, %v307_v46  ;;  %v708_v38 = vpack.c.bf16 %v474_v6, %v474_v6  ;;  %v709_v63 = vpack.c.bf16 %v475_v5, %v475_v5  ;;  %v499_v9 = vld [vmem:[%s3995_s5] sm:$0xff]  ;;  %s2087_s5 = smov 16  }
  0x5a   :  { %1843 = vmatmul.msk.bf16.gmra.mxu3 %vm517_vm2, %v2691_v41  ;;  %v710_v52 = vpack.c.bf16 %v476_v29, %v476_v29  ;;  %v711_v7 = vpack.c.bf16 %v477_v31, %v477_v31  ;;  %v459_v4 = vadd.f32 %v435_v18, %v300_v35  ;;  %v467_v42 = vadd.f32 %v443_v55, %v308_v13 }
  0x5b   :  { %v301_v15 = vadd.f32 %v277_v56, %v142_v10  ;;  %v309_v47 = vadd.f32 %v285_v27, %v150_v21  ;;  %v743_v24 = vand.u32 %v708_v38, %v2228_v25  ;;  %v746_v8 = vand.u32 %v709_v63, %v2228_v25 }
  0x5c   :  { %v749_v53 = vand.u32 %v710_v52, %v2228_v25  ;;  %v752_v20 = vand.u32 %v711_v7, %v2228_v25  ;;  %v302_v0 = vadd.f32 %v278_v57, %v143_v11  ;;  %v310_v51 = vadd.f32 %v286_v30, %v151_v44 }
  0x5d   :  { %v460_v61 = vadd.f32 %v436_v22, %v301_v15  ;;  %v468_v17 = vadd.f32 %v444_v28, %v309_v47  ;;  %v700_v32 = vpack.c.bf16 %v466_v54, %v458_v33  ;;  %832 = vmatpush.bf16.msrb.mxu0 %v743_v24  ;;  %850 = vmatpush.bf16.msrb.mxu1 %v746_v8  ;;  %v501_v43 = vperm.slane %v499_v9, 0 }
  0x5e   :  { %v701_v60 = vpack.c.bf16 %v467_v42, %v459_v4  ;;  %v461_v48 = vadd.f32 %v437_v12, %v302_v0  ;;  %v469_v26 = vadd.f32 %v445_v16, %v310_v51  ;;  %868 = vmatpush.bf16.msrb.mxu2 %v749_v53  ;;  %886 = vmatpush.bf16.msrb.mxu3 %v752_v20  ;;  %v502_v36 = vperm.slane %v499_v9, 1 }
  0x5f   :  { %v702_v37 = vpack.c.bf16 %v468_v17, %v460_v61  ;;  %v3074_v10 = vperm.slane %v499_v9, 2  ;;  %v3077_v56 = vperm.slane %v499_v9, 3  ;;  %v3086_v19 = vperm.slane %v499_v9, 4 }
  0x60   :  { %v703_v25 = vpack.c.bf16 %v469_v26, %v461_v48  ;;  %v3088_v62 = vperm.slane %v499_v9, 5  ;;  %v3090_v46 = vperm.slane %v499_v9, 6  ;;  %v3093_v5 = vperm.slane %v499_v9, 7 }
  0x61   :  { %833 = vmatpush.bf16.msrb.mxu0 %v700_v32  ;;  %851 = vmatpush.bf16.msrb.mxu1 %v701_v60 }
  0x62   :  { %1844 = vmatmul.msk.bf16.vlgmr.msra.gmra.mxu0 %vm517_vm2, %v2525_v23  ;;  %869 = vmatpush.bf16.msrb.mxu2 %v702_v37 }
  0x63   :  { %1846 = vmatmul.msk.bf16.vlgmr.msra.gmra.mxu1 %vm517_vm2, %v2525_v23  ;;  %887 = vmatpush.bf16.msrb.mxu3 %v703_v25 }
  0x66   :  { %1848 = vmatmul.msk.bf16.vlgmr.msra.gmra.mxu2 %vm517_vm2, %v2525_v23 }
  0x6a   :  { %1850 = vmatmul.msk.bf16.vlgmr.msra.gmra.mxu3 %vm517_vm2, %v2525_v23 }
  0x72   :  { %1845 = vmatmul.msk.bf16.gmra.mxu0 %vm517_vm2, %v2691_v41 }
  0x73   :  { %1847 = vmatmul.msk.bf16.gmra.mxu1 %vm517_vm2, %v2691_v41 }
  0x76   :  { %1849 = vmatmul.msk.bf16.gmra.mxu2 %vm517_vm2, %v2691_v41 }
  0x7a   :  { %1851 = vmatmul.msk.bf16.gmra.mxu3 %vm517_vm2, %v2691_v41 }
  0x82   :  { %1852 = vmatmul.msk.bf16.vlgmr.msrb.gmra.mxu0 %vm517_vm2, %v2525_v23 }
  0x83   :  { %1854 = vmatmul.msk.bf16.vlgmr.msrb.gmra.mxu1 %vm517_vm2, %v2525_v23 }
  0x86   :  { %1856 = vmatmul.msk.bf16.vlgmr.msrb.gmra.mxu2 %vm517_vm2, %v2525_v23 }
  0x8a   :  { %1858 = vmatmul.msk.bf16.vlgmr.msrb.gmra.mxu3 %vm517_vm2, %v2525_v23 }
  0x92   :  { %1853 = vmatmul.msk.bf16.gmra.mxu0 %vm517_vm2, %v2691_v41 }
  0x93   :  { %1855 = vmatmul.msk.bf16.gmra.mxu1 %vm517_vm2, %v2691_v41 }
  0x96   :  { %1857 = vmatmul.msk.bf16.gmra.mxu2 %vm517_vm2, %v2691_v41 }
  0x9a   :  { %1859 = vmatmul.msk.bf16.gmra.mxu3 %vm517_vm2, %v2691_v41 }
  0x9f   :  { %v561_v34 = vpop.f32.mrf.mxu0 }
  0xa0   :  { %v579_v23 = vpop.f32.mrf.mxu1  ;;  %v562_v2 = vadd.f32 %v561_v34, %v501_v43 }
  0xa1   :  { %v580_v39 = vadd.f32 %v579_v23, %v502_v36 }
  0xa2   :  { %v1860_v18 = vmul.f32 -1.442695, %v562_v2 }
  0xa3   :  { %v1861_v55 = vmul.f32 -1.442695, %v580_v39 }
  0xa4   :  { %1922 = vpow2.f32 %v1860_v18 }
  0xa5   :  { %1924 = vpow2.f32 %v1861_v55 }
  0xa7   :  { %v563_v21 = vpop.f32.mrf.mxu0 }
  0xa8   :  { %v597_v1 = vpop.f32.mrf.mxu2  ;;  %v564_v45 = vadd.f32 %v563_v21, %v501_v43  ;;  %v581_v41 = vpop.f32.mrf.mxu1 }
  0xa9   :  { %v598_v40 = vadd.f32 %v597_v1, %v3074_v10  ;;  %v582_v27 = vadd.f32 %v581_v41, %v502_v36 }
  0xaa   :  { %v1923_v59 = vpop.eup %1922  ;;  %v1868_v11 = vmul.f32 -1.442695, %v564_v45 }
  0xab   :  { %v1862_v22 = vmul.f32 -1.442695, %v598_v40  ;;  %v1925_v50 = vpop.eup %1924  ;;  %v3079_v28 = vadd.f32 1.0, %v1923_v59  ;;  %v615_v14 = vpop.f32.mrf.mxu3  ;;  %v1869_v30 = vmul.f32 -1.442695, %v582_v27 }
  0xac   :  { %v3081_v44 = vadd.f32 1.0, %v1925_v50  ;;  %v616_v57 = vadd.f32 %v615_v14, %v3077_v56 }
  0xad   :  { %1926 = vpow2.f32 %v1862_v22  ;;  %v1003_v31 = vand.u32 2147483647, %v3079_v28  ;;  %v1005_v12 = vand.u32 2147483648, %v3079_v28  ;;  %vm999_vm3 = vweird.f32 %v3079_v28 }
  0xae   :  { %1928 = vrcp.f32 %v3079_v28  ;;  %v1863_v3 = vmul.f32 -1.442695, %v616_v57  ;;  %v1018_v38 = vand.u32 2147483647, %v3081_v44  ;;  %vm1014_vm4 = vweird.f32 %v3081_v44 }
  0xaf   :  { %1930 = vrcp.f32 %v3081_v44  ;;  %v566_v49 = vpop.f32.mrf.mxu0  ;;  %v1020_v24 = vand.u32 2147483648, %v3081_v44  ;;  %vm3110_vm5 = vcmp.eq.f32.partialorder %v1003_v31, 8.507059e+37  ;;  %v1006_v61 = vor.u32 1.1754944e-38, %v1005_v12 }
  0xb0   :  { %1932 = vpow2.f32 %v1868_v11  ;;  %v599_v58 = vpop.f32.mrf.mxu2  ;;  %v567_v13 = vadd.f32 %v566_v49, %v501_v43  ;;  %v584_v6 = vpop.f32.mrf.mxu1  ;;  %vm3116_vm7 = vcmp.eq.f32.partialorder %v1018_v38, 8.507059e+37 }
  0xb1   :  { %1934 = vpow2.f32 %v1863_v3  ;;  %v600_v35 = vadd.f32 %v599_v58, %v3074_v10  ;;  %v585_v29 = vadd.f32 %v584_v6, %v502_v36  ;;  %v1021_v27 = vor.u32 1.1754944e-38, %v1020_v24 }
  0xb2   :  { %1936 = vpow2.f32 %v1869_v30  ;;  %v1876_v54 = vmul.f32 -1.442695, %v567_v13 }
  0xb3   :  { %v1927_v16 = vpop.eup %1926  ;;  %v1870_v33 = vmul.f32 -1.442695, %v600_v35  ;;  %v617_v7 = vpop.f32.mrf.mxu3  ;;  %v1877_v4 = vmul.f32 -1.442695, %v585_v29 }
  0xb4   :  { %v1929_v63 = vpop.eup %1928  ;;  %v3098_v52 = vadd.f32 1.0, %v1927_v16  ;;  %v618_v47 = vadd.f32 %v617_v7, %v3077_v56 }
  0xb5   :  { %v3102_v42 = vpop.eup %1930  ;;  %v995_v15 = vmul.f32 %v1929_v63, %v3079_v28  ;;  %1938 = vpow2.f32 %v1870_v33  ;;  %vm1000_vm6 = vweird.f32 %v1929_v63 }
  0xb6   :  { %v1933_v8 = vpop.eup %1932  ;;  %v1010_v53 = vmul.f32 %v3102_v42, %v3081_v44  ;;  %1940 = vrcp.f32 %v3098_v52  ;;  %v1871_v37 = vmul.f32 -1.442695, %v618_v47  ;;  %vm1015_vm8 = vweird.f32 %v3102_v42  ;;  %vm1001_vm9 = vmor %vm999_vm3, %vm1000_vm6 }
  0xb7   :  { %v1935_v17 = vpop.eup %1934  ;;  %v996_v0 = vsub.f32 1.0, %v995_v15  ;;  %v3114_v51 = vadd.f32 1.0, %v1933_v8  ;;  %1942 = vpow2.f32 %v1876_v54  ;;  %v568_v9 = vpop.f32.mrf.mxu0  ;;  %v1033_v39 = vand.u32 2147483647, %v3098_v52  ;;  %vm3147_vm10 = vmor %vm1014_vm4, %vm1015_vm8 }
  0xb8   :  { %v1937_v60 = vpop.eup %1936  ;;  %v1011_v48 = vsub.f32 1.0, %v1010_v53  ;;  %v3120_v26 = vadd.f32 1.0, %v1935_v17  ;;  %1944 = vpow2.f32 %v1877_v4  ;;  %v602_v25 = vpop.f32.mrf.mxu2  ;;  %v1035_v21 = vand.u32 2147483648, %v3098_v52 }
  0xb9   :  { %v997_v43 = vmul.f32 %v1929_v63, %v996_v0  ;;  %1946 = vrcp.f32 %v3114_v51  ;;  %v3123_v36 = vadd.f32 1.0, %v1937_v60  ;;  %v603_v34 = vadd.f32 %v602_v25, %v3074_v10  ;;  %v586_v23 = vpop.f32.mrf.mxu1 }
  0xba   :  { %v1012_v2 = vmul.f32 %v3102_v42, %v1011_v48  ;;  %1948 = vrcp.f32 %v3120_v26  ;;  %vm1029_vm11 = vweird.f32 %v3098_v52  ;;  %vm3166_vm12 = vcmp.eq.f32.partialorder %v1033_v39, 8.507059e+37 }
  0xbb   :  { %v1939_v18 = vpop.eup %1938  ;;  %1950 = vrcp.f32 %v3123_v36  ;;  %v1878_v55 = vmul.f32 -1.442695, %v603_v34  ;;  %v998_v1 = vadd.f32 %v1929_v63, %v997_v43  ;;  %v620_v10 = vpop.f32.mrf.mxu3  ;;  %v1036_v13 = vor.u32 1.1754944e-38, %v1035_v21 }
  0xbc   :  { %v3132_v40 = vpop.eup %1940  ;;  %v3134_v45 = vadd.f32 1.0, %v1939_v18  ;;  %1952 = vpow2.f32 %v1871_v37  ;;  %v1013_v41 = vadd.f32 %v3102_v42, %v1012_v2  ;;  %v621_v50 = vadd.f32 %v620_v10, %v3077_v56 }
  0xbd   :  { %v1943_v59 = vpop.eup %1942  ;;  %v1025_v22 = vmul.f32 %v3132_v40, %v3098_v52  ;;  %1954 = vpow2.f32 %v1878_v55  ;;  %v1002_v14 = vsel %vm1001_vm9, %v1929_v63, %v998_v1  ;;  %vm1030_vm13 = vweird.f32 %v3132_v40  ;;  %v3228_v52 = vld [vmem:[%s3996_s6] sm:$0xff]  ;;  %s3278_s6 = sld [smem:[#allocation2]] }
  0xbe   :  { %v1945_v28 = vpop.eup %1944  ;;  %1956 = vrcp.f32 %v3134_v45  ;;  %v3153_v57 = vadd.f32 1.0, %v1943_v59  ;;  %v3157_v30 = vsel %vm3110_vm5, %v1006_v61, %v1002_v14  ;;  %v1017_v56 = vsel %vm3147_vm10, %v3102_v42, %v1013_v41  ;;  %vm1031_vm15 = vmor %vm1029_vm11, %vm1030_vm13 }
  0xbf   :  { %v3162_v44 = vpop.eup %1946  ;;  %v1026_v3 = vsub.f32 1.0, %v1025_v22  ;;  %v3164_v58 = vadd.f32 1.0, %v1945_v28  ;;  %v1879_v49 = vmul.f32 -1.442695, %v621_v50  ;;  %v633_v12 = vpop.f32.mrf.mxu0  ;;  %v3178_v33 = vsel %vm3116_vm7, %v1021_v27, %v1017_v56 }
  0xc0   :  { %v3170_v6 = vpop.eup %1948  ;;  %v1115_v29 = vmul.f32 %v3162_v44, %v3114_v51  ;;  %1958 = vrcp.f32 %v3153_v57  ;;  %v604_v31 = vpop.f32.mrf.mxu2  ;;  %v634_v7 = vadd.f32 %v633_v12, %v3086_v19  ;;  %vm1044_vm14 = vweird.f32 %v3120_v26 }
  0xc1   :  { %v3180_v54 = vpop.eup %1950  ;;  %v1027_v38 = vmul.f32 %v3132_v40, %v1026_v3  ;;  %v1040_v63 = vmul.f32 %v3170_v6, %v3120_v26  ;;  %1960 = vrcp.f32 %v3164_v58  ;;  %v651_v4 = vpop.f32.mrf.mxu1  ;;  %vm1045_vm0 = vweird.f32 %v3170_v6 }
  0xc2   :  { %v1953_v42 = vpop.eup %1952  ;;  %v1116_v15 = vsub.f32 1.0, %v1115_v29  ;;  %v1130_v47 = vmul.f32 %v3180_v54, %v3123_v36  ;;  %1962 = vpow2.f32 %v1879_v49  ;;  %v652_v24 = vadd.f32 %v651_v4, %v3088_v62  ;;  %vm3272_vm1 = vmor %vm1044_vm14, %vm1045_vm0 }
  0xc3   :  { %v1955_v8 = vpop.eup %1954  ;;  %v1041_v53 = vsub.f32 1.0, %v1040_v63  ;;  %v3190_v20 = vadd.f32 1.0, %v1953_v42  ;;  %v1864_v61 = vmul.f32 -1.442695, %v634_v7  ;;  %v622_v60 = vpop.f32.mrf.mxu3  ;;  %v1028_v43 = vadd.f32 %v3132_v40, %v1027_v38 }
  0xc4   :  { %v3193_v17 = vpop.eup %1956  ;;  %v1131_v0 = vsub.f32 1.0, %v1130_v47  ;;  %v3195_v32 = vadd.f32 1.0, %v1955_v8  ;;  %v1865_v48 = vmul.f32 -1.442695, %v652_v24  ;;  %v3207_v23 = vmul.f32 %v3162_v44, %v1116_v15 }
  0xc5   :  { %v1042_v25 = vmul.f32 %v3170_v6, %v1041_v53  ;;  %v1145_v9 = vmul.f32 %v3193_v17, %v3134_v45  ;;  %1964 = vrcp.f32 %v3190_v20  ;;  %v1032_v1 = vsel %vm1031_vm15, %v3132_v40, %v1028_v43 }
  0xc6   :  { %v3204_v34 = vpop.eup %1958  ;;  %v3210_v2 = vmul.f32 %v3180_v54, %v1131_v0  ;;  %1966 = vrcp.f32 %v3195_v32  ;;  %v3232_v27 = vsel %vm3166_vm12, %v1036_v13, %v1032_v1  ;;  %v1048_v59 = vand.u32 2147483647, %v3120_v26 }
  0xc7   :  { %v3218_v39 = vpop.eup %1960  ;;  %v1146_v18 = vsub.f32 1.0, %v1145_v9  ;;  %v1235_v55 = vmul.f32 %v3204_v34, %v3153_v57  ;;  %1968 = vpow2.f32 %v1864_v61  ;;  %v635_v41 = vpop.f32.mrf.mxu0  ;;  %v3239_v11 = vadd.f32 %v3170_v6, %v1042_v25 }
  0xc8   :  { %v1963_v21 = vpop.eup %1962  ;;  %v1250_v10 = vmul.f32 %v3218_v39, %v3164_v58  ;;  %1970 = vpow2.f32 %v1865_v48  ;;  %v636_v40 = vadd.f32 %v635_v41, %v3086_v19  ;;  %v3246_v35 = vperm.slane %v3228_v52, 0 }
  0xc9   :  { %v1236_v22 = vsub.f32 1.0, %v1235_v55  ;;  %v3235_v50 = vadd.f32 1.0, %v1963_v21  ;;  %v653_v14 = vpop.f32.mrf.mxu1  ;;  %v3242_v28 = vmul.f32 %v3193_v17, %v1146_v18  ;;  %v669_v3 = vpop.f32.mrf.mxu2  ;;  %v3253_v12 = vperm.slane %v3228_v52, 1 }
  0xca   :  { %v1251_v56 = vsub.f32 1.0, %v1250_v10  ;;  %v654_v49 = vadd.f32 %v653_v14, %v3088_v62  ;;  %v670_v29 = vadd.f32 %v669_v3, %v3090_v46  ;;  %v1872_v31 = vmul.f32 -1.442695, %v636_v40 }
  0xcb   :  { %v3248_v13 = vpop.eup %1964  ;;  %1972 = vrcp.f32 %v3235_v50  ;;  %v3260_v7 = vmul.f32 %v3204_v34, %v1236_v22  ;;  %v1047_v25 = vsel %vm3272_vm1, %v3170_v6, %v3239_v11  ;;  %v3294_v21 = vperm.slane %v3228_v52, 2 }
  0xcc   :  { %v3255_v38 = vpop.eup %1966  ;;  %v1160_v63 = vmul.f32 %v3248_v13, %v3190_v20  ;;  %v3263_v4 = vmul.f32 %v3218_v39, %v1251_v56  ;;  %v1873_v42 = vmul.f32 -1.442695, %v654_v49  ;;  %v1866_v24 = vmul.f32 -1.442695, %v670_v29 }
  0xcd   :  { %v1969_v15 = vpop.eup %1968  ;;  %v1265_v47 = vmul.f32 %v3255_v38, %v3195_v32  ;;  %1974 = vpow2.f32 %v1872_v31  ;;  %v687_v48 = vpop.f32.mrf.mxu3  ;;  %vm3296_vm3 = vcmp.eq.f32.partialorder %v1048_v59, 8.507059e+37  ;;  %v3305_v14 = vperm.slane %v3228_v52, 3 }
  0xce   :  { %v1971_v61 = vpop.eup %1970  ;;  %v1161_v0 = vsub.f32 1.0, %v1160_v63  ;;  %v3276_v60 = vadd.f32 1.0, %v1969_v15  ;;  %1976 = vpow2.f32 %v1873_v42  ;;  %v688_v18 = vadd.f32 %v687_v48, %v3093_v5 }
  0xcf   :  { %v1266_v9 = vsub.f32 1.0, %v1265_v47  ;;  %v3284_v43 = vadd.f32 1.0, %v1971_v61  ;;  %1978 = vpow2.f32 %v1866_v24  ;;  %v638_v1 = vpop.f32.mrf.mxu0  ;;  %v1050_v49 = vand.u32 2147483648, %v3120_v26 }
  0xd0   :  { %4147 = vst [vmem:[#allocation8_spill] sm:$0xff] %v3276_v60  ;;  %v3288_v55 = vmul.f32 %v3248_v13, %v1161_v0  ;;  %1980 = vrcp.f32 %v3276_v60  ;;  %v1867_v41 = vmul.f32 -1.442695, %v688_v18  ;;  %v639_v22 = vadd.f32 %v638_v1, %v3086_v19 }
  0xd1   :  { %4148 = vst [vmem:[#allocation9_spill] sm:$0xff] %v3284_v43  ;;  %v3300_v6 = vpop.eup %1972  ;;  %1982 = vrcp.f32 %v3284_v43  ;;  %v656_v40 = vpop.f32.mrf.mxu1  ;;  %v3308_v11 = vmul.f32 %v3255_v38, %v1266_v9  ;;  %v3321_v63 = vadd.f32 %v3162_v44, %v3207_v23  ;;  %vm1119_vm4 = vweird.f32 %v3114_v51 }
  0xd2   :  { %v1280_v59 = vmul.f32 %v3300_v6, %v3235_v50  ;;  %v671_v56 = vpop.f32.mrf.mxu2  ;;  %v657_v3 = vadd.f32 %v656_v40, %v3088_v62  ;;  %1984 = vpow2.f32 %v1867_v41  ;;  %v1880_v31 = vmul.f32 -1.442695, %v639_v22 }
  0xd3   :  { %v1975_v29 = vpop.eup %1974  ;;  %v672_v19 = vadd.f32 %v671_v56, %v3090_v46  ;;  %v1051_v61 = vor.u32 1.1754944e-38, %v1050_v49  ;;  %v3337_v18 = vstv %s3278_s6  ;;  %vm1120_vm5 = vweird.f32 %v3162_v44 }
  0xd4   :  { %v1977_v42 = vpop.eup %1976  ;;  %v1281_v15 = vsub.f32 1.0, %v1280_v59  ;;  %v3323_v47 = vadd.f32 1.0, %v1975_v29  ;;  %v1881_v62 = vmul.f32 -1.442695, %v657_v3  ;;  %1986 = vpow2.f32 %v1880_v31  ;;  %vm3373_vm6 = vmor %vm1119_vm4, %vm1120_vm5 }
  0xd5   :  { %v1979_v26 = vpop.eup %1978  ;;  %v3326_v24 = vadd.f32 1.0, %v1977_v42  ;;  %v1874_v53 = vmul.f32 -1.442695, %v672_v19  ;;  %v689_v9 = vpop.f32.mrf.mxu3  ;;  %v3347_v40 = vsel %vm3296_vm3, %v1051_v61, %v1047_v25  ;;  %v3353_v3 = vstv %s3291_s29 }
  0xd6   :  { %4151 = vst [vmem:[#allocation10_spill] sm:$0xff] %v3323_v47  ;;  %v3328_v0 = vpop.eup %1980  ;;  %v3331_v23 = vmul.f32 %v3300_v6, %v1281_v15  ;;  %v3333_v48 = vadd.f32 1.0, %v1979_v26  ;;  %1988 = vrcp.f32 %v3323_v47  ;;  %v690_v22 = vadd.f32 %v689_v9, %v3093_v5 }
  0xd7   :  { %4152 = vst [vmem:[#allocation11_spill] sm:$0xff] %v3326_v24  ;;  %v3339_v1 = vpop.eup %1982  ;;  %v1055_v41 = vmul.f32 %v3328_v0, %v3276_v60  ;;  %1990 = vrcp.f32 %v3326_v24  ;;  %v640_v56 = vpop.f32.mrf.mxu0  ;;  %v3360_v26 = vstv %s3313_s30  ;;  %vm1134_vm8 = vweird.f32 %v3123_v36 }
  0xd8   :  { %4153 = vst [vmem:[#allocation12_spill] sm:$0xff] %v3339_v1  ;;  %v1070_v59 = vmul.f32 %v3339_v1, %v3284_v43  ;;  %1992 = vrcp.f32 %v3333_v48  ;;  %v1985_v49 = vpop.eup %1984  ;;  %v1875_v19 = vmul.f32 -1.442695, %v690_v22  ;;  %vm1135_vm9 = vweird.f32 %v3180_v54 }
  0xd9   :  { %v1056_v29 = vsub.f32 1.0, %v1055_v41  ;;  %1994 = vpow2.f32 %v1874_v53  ;;  %v658_v31 = vpop.f32.mrf.mxu1  ;;  %v3357_v42 = vadd.f32 1.0, %v1985_v49  ;;  %v3367_v41 = vstv %s3317_s12  ;;  %vm3447_vm10 = vmor %vm1134_vm8, %vm1135_vm9  ;;  %s2088_s12 = smov 24  }
  0xda   :  { %v1071_v10 = vsub.f32 1.0, %v1070_v59  ;;  %1996 = vpow2.f32 %v1881_v62  ;;  %v674_v15 = vpop.f32.mrf.mxu2  ;;  %v1987_v61 = vpop.eup %1986  ;;  %v1123_v59 = vand.u32 2147483647, %v3114_v51  ;;  %vm1150_vm12 = vweird.f32 %v3193_v17 }
  0xdb   :  { %v3363_v9 = vmul.f32 %v3328_v0, %v1056_v29  ;;  %1998 = vpow2.f32 %v1875_v19  ;;  %v675_v56 = vadd.f32 %v674_v15, %v3090_v46  ;;  %v3380_v22 = vadd.f32 1.0, %v1987_v61 }
  0xdc   :  { %v3377_v62 = vpop.eup %1988  ;;  %2000 = vrcp.f32 %v3357_v42  ;;  %v1122_v46 = vsel %vm3373_vm6, %v3162_v44, %v3321_v63  ;;  %v3390_v29 = vmul.f32 %v3339_v1, %v1071_v10  ;;  %v1125_v15 = vand.u32 2147483648, %v3114_v51 }
  0xdd   :  { %4156 = vst [vmem:[#allocation13_spill] sm:$0xff] %v3377_v62  ;;  %v3387_v49 = vpop.eup %1990  ;;  %v1175_v19 = vmul.f32 %v3377_v62, %v3323_v47  ;;  %v1882_v31 = vmul.f32 -1.442695, %v675_v56  ;;  %2002 = vrcp.f32 %v3380_v22  ;;  %v692_v44 = vpop.f32.mrf.mxu3  ;;  %vm3400_vm7 = vcmp.eq.f32.partialorder %v1123_v59, 8.507059e+37 }
  0xde   :  { %4157 = vst [vmem:[#allocation21_spill] sm:$0xff] %v3380_v22  ;;  %v3395_v61 = vpop.eup %1992  ;;  %v1190_v25 = vmul.f32 %v3387_v49, %v3326_v24  ;;  %v3406_v10 = vadd.f32 %v3180_v54, %v3210_v2  ;;  %v693_v8 = vadd.f32 %v692_v44, %v3093_v5  ;;  %v1126_v47 = vor.u32 1.1754944e-38, %v1125_v15 }
  0xdf   :  { %4158 = vst [vmem:[#allocation23_spill] sm:$0xff] %v3387_v49  ;;  %v1995_v53 = vpop.eup %1994  ;;  %v1085_v51 = vmul.f32 %v3395_v61, %v3333_v48  ;;  %v1176_v56 = vsub.f32 1.0, %v1175_v19  ;;  %2004 = vpow2.f32 %v1882_v31  ;;  %v763_v59 = vpop.f32.mrf.mxu0  ;;  %vm1149_vm13 = vweird.f32 %v3134_v45 }
  0xe0   :  { %4159 = vst [vmem:[#allocation5_spill] sm:$0xff] %v3390_v29  ;;  %v1997_v37 = vpop.eup %1996  ;;  %v1191_v16 = vsub.f32 1.0, %v1190_v25  ;;  %v3411_v24 = vadd.f32 1.0, %v1995_v53  ;;  %v1883_v29 = vmul.f32 -1.442695, %v693_v8  ;;  %v764_v15 = vadd.f32 %v763_v59, %v3246_v35  ;;  %vm3499_vm14 = vmor %vm1149_vm13, %vm1150_vm12 }
  0xe1   :  { %v1999_v43 = vpop.eup %1998  ;;  %v1086_v1 = vsub.f32 1.0, %v1085_v51  ;;  %v3414_v2 = vadd.f32 1.0, %v1997_v37  ;;  %v781_v60 = vpop.f32.mrf.mxu1  ;;  %v3420_v5 = vmul.f32 %v3377_v62, %v1176_v56  ;;  %vm1164_vm0 = vweird.f32 %v3190_v20 }
  0xe2   :  { %4162 = vst [vmem:[#allocation6_spill] sm:$0xff] %v3411_v24  ;;  %v3417_v19 = vpop.eup %2000  ;;  %2006 = vrcp.f32 %v3411_v24  ;;  %v3423_v25 = vadd.f32 1.0, %v1999_v43  ;;  %v676_v31 = vpop.f32.mrf.mxu2  ;;  %v3429_v8 = vmul.f32 %v3387_v49, %v1191_v16  ;;  %v782_v44 = vadd.f32 %v781_v60, %v3253_v12 }
  0xe3   :  { %4163 = vst [vmem:[#allocation7_spill] sm:$0xff] %v3414_v2  ;;  %v1100_v37 = vmul.f32 %v3417_v19, %v3357_v42  ;;  %2008 = vrcp.f32 %v3414_v2  ;;  %v3433_v53 = vpop.eup %2002  ;;  %v3436_v51 = vmul.f32 %v3395_v61, %v1086_v1  ;;  %v3441_v43 = vsel %vm3400_vm7, %v1126_v47, %v1122_v46 }
  0xe4   :  { %4164 = vst [vmem:[#allocation14_spill] sm:$0xff] %v3423_v25  ;;  %2010 = vrcp.f32 %v3423_v25  ;;  %v1138_v60 = vand.u32 2147483647, %v3123_v36  ;;  %v1295_v1 = vmul.f32 %v3433_v53, %v3380_v22  ;;  %v1137_v47 = vsel %vm3447_vm10, %v3180_v54, %v3406_v10 }
  0xe5   :  { %4165 = vst [vmem:[#allocation15_spill] sm:$0xff] %v3429_v8  ;;  %v2005_v56 = vpop.eup %2004  ;;  %v1101_v59 = vsub.f32 1.0, %v1100_v37  ;;  %2012 = vpow2.f32 %v1883_v29  ;;  %v694_v63 = vpop.f32.mrf.mxu3  ;;  %v1140_v49 = vand.u32 2147483648, %v3123_v36  ;;  %v1153_v31 = vand.u32 2147483647, %v3134_v45 }
  0xe6   :  { %4166 = vst [vmem:[#allocation16_spill] sm:$0xff] %v3433_v53  ;;  %v3458_v46 = vadd.f32 1.0, %v2005_v56  ;;  %2014 = vtanh.f32 %v764_v15  ;;  %v1296_v37 = vsub.f32 1.0, %v1295_v1  ;;  %vm3465_vm11 = vcmp.eq.f32.partialorder %v1138_v60, 8.507059e+37 }
  0xe7   :  { %v3463_v8 = vmul.f32 %v3417_v19, %v1101_v59  ;;  %2016 = vtanh.f32 %v782_v44  ;;  %v765_v54 = vpop.f32.mrf.mxu0  ;;  %v1141_v10 = vor.u32 1.1754944e-38, %v1140_v49  ;;  %v3474_v15 = vadd.f32 %v3193_v17, %v3242_v28 }
  0xe8   :  { %4169 = vst [vmem:[#allocation17_spill] sm:$0xff] %v3458_v46  ;;  %v3469_v22 = vpop.eup %2006  ;;  %2018 = vrcp.f32 %v3458_v46  ;;  %v3482_v16 = vmul.f32 %v3433_v53, %v1296_v37  ;;  %v766_v60 = vadd.f32 %v765_v54, %v3246_v35  ;;  %vm3526_vm15 = vcmp.eq.f32.partialorder %v1153_v31, 8.507059e+37 }
  0xe9   :  { %4172 = vst [vmem:[#allocation18_spill] sm:$0xff] %v3469_v22  ;;  %v3477_v36 = vpop.eup %2008  ;;  %v1205_v44 = vmul.f32 %v3469_v22, %v3411_v24  ;;  %v783_v56 = vpop.f32.mrf.mxu1  ;;  %v1142_v63 = vsel %vm3465_vm11, %v1141_v10, %v1137_v47  ;;  %v1152_v47 = vsel %vm3499_vm14, %v3193_v17, %v3474_v15  ;;  %vm1165_vm1 = vweird.f32 %v3248_v13 }
  0xea   :  { %4173 = vst [vmem:[#allocation19_spill] sm:$0xff] %v3477_v36  ;;  %v3486_v49 = vpop.eup %2010  ;;  %v1310_v28 = vmul.f32 %v3477_v36, %v3414_v2  ;;  %v799_v59 = vpop.f32.mrf.mxu2  ;;  %v784_v1 = vadd.f32 %v783_v56, %v3253_v12  ;;  %2020 = vtanh.f32 %v766_v60  ;;  %v4177_v60 = vsub.f32 1.0, %v3157_v30  ;;  %vm3549_vm3 = vmor %vm1164_vm0, %vm1165_vm1 }
  0xeb   :  { %4174 = vst [vmem:[#allocation20_spill] sm:$0xff] %v3482_v16  ;;  %v2013_v37 = vpop.eup %2012  ;;  %v1206_v53 = vsub.f32 1.0, %v1205_v44  ;;  %v1220_v54 = vmul.f32 %v3486_v49, %v3423_v25  ;;  %v800_v16 = vadd.f32 %v799_v59, %v3294_v21  ;;  %v1387_v25 = vsub.f32 1.0, %v1142_v63 }
  0xec   :  { %v2015_v56 = vpop.eup %2014  ;;  %v1311_v24 = vsub.f32 1.0, %v1310_v28  ;;  %v3503_v29 = vadd.f32 1.0, %v2013_v37  ;;  %2022 = vtanh.f32 %v784_v1  ;;  %v4179_v2 = vsub.f32 1.0, %v3178_v33 }
  0xed   :  { %v2017_v10 = vpop.eup %2016  ;;  %v3510_v44 = vmul.f32 %v3469_v22, %v1206_v53  ;;  %v1402_v59 = vmul.f32 %v2015_v56, %v4177_v60  ;;  %2024 = vtanh.f32 %v800_v16  ;;  %v1221_v28 = vsub.f32 1.0, %v1220_v54  ;;  %v817_v15 = vpop.f32.mrf.mxu3 }
  0xee   :  { %v3514_v62 = vpop.eup %2018  ;;  %v3517_v37 = vmul.f32 %v3477_v36, %v1311_v24  ;;  %2026 = vrcp.f32 %v3503_v29  ;;  %v1403_v17 = vmul.f32 %v2017_v10, %v4179_v2  ;;  %v818_v16 = vadd.f32 %v817_v15, %v3305_v14 }
  0xef   :  { %v1325_v53 = vmul.f32 %v3514_v62, %v3458_v46  ;;  %v1428_v30 = vmul.f32 %v3337_v18, %v1402_v59  ;;  %v1155_v63 = vand.u32 2147483648, %v3134_v45  ;;  %v1163_v33 = vadd.f32 %v3248_v13, %v3288_v55  ;;  %v768_v54 = vpop.f32.mrf.mxu0 }
  0xf0   :  { %4178 = vst [vmem:[#allocation22_spill] sm:$0xff] %v3517_v37  ;;  %v1433_v24 = vmul.f32 %v3353_v3, %v1403_v17  ;;  %v2021_v56 = vpop.eup %2020  ;;  %2028 = vtanh.f32 %v818_v16  ;;  %v1168_v31 = vand.u32 2147483647, %v3190_v20  ;;  %v4182_v17 = vsub.f32 1.0, %v3441_v43 }
  0xf1   :  { %v1326_v10 = vsub.f32 1.0, %v1325_v53  ;;  %v786_v60 = vpop.f32.mrf.mxu1  ;;  %v1156_v46 = vor.u32 1.1754944e-38, %v1155_v63  ;;  %v1170_v55 = vand.u32 2147483648, %v3190_v20  ;;  %v3541_v37 = vmul.f32 %v3486_v49, %v1221_v28 }
  0xf2   :  { %v2023_v59 = vpop.eup %2022  ;;  %v1436_v2 = vadd.f32 %v1433_v24, %v1428_v30  ;;  %v1410_v15 = vmul.f32 %v2021_v56, %v4182_v17  ;;  %v801_v45 = vpop.f32.mrf.mxu2  ;;  %v4185_v24 = vsub.f32 1.0, %v3232_v27  ;;  %vm1169_vm4 = vcmp.eq.f32.partialorder %v1168_v31, 8.507059e+37 }
  0xf3   :  { %v2025_v36 = vpop.eup %2024  ;;  %v3544_v53 = vmul.f32 %v3514_v62, %v1326_v10  ;;  %v1411_v16 = vmul.f32 %v2023_v59, %v1387_v25  ;;  %v802_v22 = vadd.f32 %v801_v45, %v3294_v21  ;;  %v1157_v56 = vsel %vm3526_vm15, %v1156_v46, %v1152_v47 }
  0xf4   :  { %v3553_v43 = vpop.eup %2026  ;;  %v1404_v63 = vmul.f32 %v2025_v36, %v4185_v24  ;;  %v1429_v28 = vmul.f32 %v3337_v18, %v1410_v15  ;;  %v1167_v25 = vsel %vm3549_vm3, %v3248_v13, %v1163_v33  ;;  %v1171_v59 = vor.u32 1.1754944e-38, %v1170_v55 }
  0xf5   :  { %v3565_v20 = vmul.f32 %v3553_v43, %v3503_v29  ;;  %v1434_v10 = vmul.f32 %v3353_v3, %v1411_v16  ;;  %2030 = vtanh.f32 %v802_v22  ;;  %v819_v36 = vpop.f32.mrf.mxu3  ;;  %v769_v17 = vadd.f32 %v768_v54, %v3246_v35 }
  0xf6   :  { %v1441_v27 = vmul.f32 %v3360_v26, %v1404_v63  ;;  %v1238_v46 = vadd.f32 %v3204_v34, %v3260_v7  ;;  %v2029_v47 = vpop.eup %2028  ;;  %v1388_v13 = vsub.f32 1.0, %v1157_v56  ;;  %v820_v33 = vadd.f32 %v819_v36, %v3305_v14  ;;  %v4199_v7 = vld [vmem:[#allocation12_spill] sm:$0xff] }
  0xf7   :  { %v1437_v1 = vadd.f32 %v1434_v10, %v1429_v28  ;;  %vm1239_vm5 = vweird.f32 %v3153_v57  ;;  %v4186_v22 = vsub.f32 1.0, %v3347_v40  ;;  %v1172_v45 = vsel %vm1169_vm4, %v1171_v59, %v1167_v25  ;;  %v770_v55 = vpop.f32.mrf.mxu0 }
  0xf8   :  { %v1444_v15 = vadd.f32 %v1441_v27, %v1436_v2  ;;  %vm1240_vm6 = vweird.f32 %v3204_v34  ;;  %v1341_v35 = vsub.f32 1.0, %v3565_v20  ;;  %2032 = vtanh.f32 %v820_v33 }
  0xf9   :  { %v1405_v31 = vmul.f32 %v2029_v47, %v4186_v22  ;;  %v1389_v54 = vsub.f32 1.0, %v1172_v45  ;;  %vm3578_vm7 = vmor %vm1239_vm5, %vm1240_vm6  ;;  %v1243_v16 = vand.u32 2147483647, %v3153_v57  ;;  %v788_v30 = vpop.f32.mrf.mxu1  ;;  %v1245_v24 = vand.u32 2147483648, %v3153_v57 }
  0xfa   :  { %v1242_v40 = vsel %vm3578_vm7, %v3204_v34, %v1238_v46  ;;  %2034 = vtanh.f32 %v769_v17  ;;  %v804_v63 = vpop.f32.mrf.mxu2  ;;  %v787_v56 = vadd.f32 %v786_v60, %v3253_v12  ;;  %v1253_v25 = vadd.f32 %v3218_v39, %v3263_v4 }
  0xfb   :  { %v1449_v2 = vmul.f32 %v3367_v41, %v1405_v31  ;;  %v2031_v28 = vpop.eup %2030  ;;  %vm1244_vm8 = vcmp.eq.f32.partialorder %v1243_v16, 8.507059e+37  ;;  %vm1254_vm9 = vweird.f32 %v3164_v58  ;;  %v1246_v36 = vor.u32 1.1754944e-38, %v1245_v24 }
  0xfc   :  { %v1412_v27 = vmul.f32 %v2031_v28, %v1388_v13  ;;  %vm1255_vm10 = vweird.f32 %v3218_v39  ;;  %v1258_v57 = vand.u32 2147483647, %v3164_v58  ;;  %v1260_v59 = vand.u32 2147483648, %v3164_v58 }
  0xfd   :  { %v3592_v10 = vadd.f32 %v1449_v2, %v1444_v15  ;;  %vm3595_vm11 = vmor %vm1254_vm9, %vm1255_vm10  ;;  %2036 = vtanh.f32 %v787_v56  ;;  %v805_v12 = vadd.f32 %v804_v63, %v3294_v21  ;;  %v1247_v60 = vsel %vm1244_vm8, %v1246_v36, %v1242_v40  ;;  %v822_v47 = vpop.f32.mrf.mxu3 }
  0xfe   :  { %v1442_v4 = vmul.f32 %v3360_v26, %v1412_v27  ;;  %v1257_v17 = vsel %vm3595_vm11, %v3218_v39, %v1253_v25  ;;  %v1268_v46 = vadd.f32 %v3255_v38, %v3308_v11  ;;  %v2033_v13 = vpop.eup %2032  ;;  %v1394_v33 = vsub.f32 1.0, %v1247_v60  ;;  %v4195_v60 = vld [vmem:[#allocation8_spill] sm:$0xff] }
  0xff   :  { %vm1259_vm12 = vcmp.eq.f32.partialorder %v1258_v57, 8.507059e+37  ;;  %v1261_v15 = vor.u32 1.1754944e-38, %v1260_v59  ;;  %vm1269_vm13 = vweird.f32 %v3195_v32  ;;  %v1413_v21 = vmul.f32 %v2033_v13, %v1389_v54  ;;  %v835_v45 = vpop.f32.mrf.mxu0 }
 0x100   :  { %v2035_v58 = vpop.eup %2034  ;;  %v1445_v22 = vadd.f32 %v1442_v4, %v1437_v1  ;;  %vm1270_vm14 = vweird.f32 %v3255_v38  ;;  %v1273_v31 = vand.u32 2147483647, %v3195_v32  ;;  %v1275_v11 = vand.u32 2147483648, %v3195_v32 }
 0x101   :  { %v1418_v55 = vmul.f32 %v2035_v58, %v1394_v33  ;;  %v1262_v39 = vsel %vm1259_vm12, %v1261_v15, %v1257_v17  ;;  %vm3611_vm15 = vmor %vm1269_vm13, %vm1270_vm14  ;;  %2038 = vtanh.f32 %v805_v12  ;;  %v853_v16 = vpop.f32.mrf.mxu1  ;;  %v1450_v30 = vmul.f32 %v3367_v41, %v1413_v21 }
 0x102   :  { %v1395_v2 = vsub.f32 1.0, %v1262_v39  ;;  %v1272_v1 = vsel %vm3611_vm15, %v3255_v38, %v1268_v46  ;;  %vm1274_vm0 = vcmp.eq.f32.partialorder %v1273_v31, 8.507059e+37  ;;  %v806_v54 = vpop.f32.mrf.mxu2  ;;  %v1276_v63 = vor.u32 1.1754944e-38, %v1275_v11  ;;  %v4198_v39 = vld [vmem:[#allocation5_spill] sm:$0xff] }
 0x103   :  { %v2037_v40 = vpop.eup %2036  ;;  %v1430_v24 = vmul.f32 %v3337_v18, %v1418_v55  ;;  %v823_v28 = vadd.f32 %v822_v47, %v3305_v14  ;;  %v1283_v32 = vadd.f32 %v3300_v6, %v3331_v23  ;;  %v3624_v56 = vadd.f32 %v1450_v30, %v1445_v22  ;;  %v3778_v54 = vld [vmem:[%s3997_s7] sm:$0xff] }
 0x104   :  { %v1419_v25 = vmul.f32 %v2037_v40, %v1395_v2  ;;  %vm1284_vm1 = vweird.f32 %v3235_v50  ;;  %vm1285_vm3 = vweird.f32 %v3300_v6  ;;  %v1277_v27 = vsel %vm1274_vm0, %v1276_v63, %v1272_v1  ;;  %v4200_v2 = vld [vmem:[#allocation9_spill] sm:$0xff] }
 0x105   :  { %vm3628_vm4 = vmor %vm1284_vm1, %vm1285_vm3  ;;  %v1288_v18 = vand.u32 2147483647, %v3235_v50  ;;  %v1290_v36 = vand.u32 2147483648, %v3235_v50  ;;  %2040 = vtanh.f32 %v823_v28  ;;  %v1396_v23 = vsub.f32 1.0, %v1277_v27  ;;  %v824_v57 = vpop.f32.mrf.mxu3 }
 0x106   :  { %v1435_v14 = vmul.f32 %v3353_v3, %v1419_v25  ;;  %v1287_v34 = vsel %vm3628_vm4, %v3300_v6, %v1283_v32  ;;  %v3639_v59 = vperm.slane %v3228_v52, 4  ;;  %v1058_v50 = vadd.f32 %v3328_v0, %v3363_v9 }
 0x107   :  { %v2039_v12 = vpop.eup %2038  ;;  %vm1289_vm5 = vcmp.eq.f32.partialorder %v1288_v18, 8.507059e+37  ;;  %v1291_v4 = vor.u32 1.1754944e-38, %v1290_v36  ;;  %vm1059_vm6 = vweird.f32 %v4195_v60  ;;  %vm1060_vm7 = vweird.f32 %v3328_v0  ;;  %v3648_v6 = vpop.f32.mrf.mxu0 }
 0x108   :  { %v1438_v3 = vadd.f32 %v1435_v14, %v1430_v24  ;;  %v1420_v17 = vmul.f32 %v2039_v12, %v1396_v23  ;;  %v836_v46 = vadd.f32 %v835_v45, %v3639_v59  ;;  %v3653_v47 = vmul.f32 %v3553_v43, %v1341_v35  ;;  %vm3655_vm8 = vmor %vm1059_vm6, %vm1060_vm7  ;;  %v4214_v12 = vld [vmem:[#allocation23_spill] sm:$0xff] }
 0x109   :  { %v1292_v13 = vsel %vm1289_vm5, %v1291_v4, %v1287_v34  ;;  %v1063_v9 = vand.u32 2147483647, %v4195_v60  ;;  %v1065_v15 = vand.u32 2147483648, %v4195_v60  ;;  %v3661_v58 = vpop.f32.mrf.mxu1  ;;  %v1062_v20 = vsel %vm3655_vm8, %v3328_v0, %v1058_v50 }
 0x10a   :  { %v1443_v22 = vmul.f32 %v3360_v26, %v1420_v17  ;;  %v1397_v21 = vsub.f32 1.0, %v1292_v13  ;;  %2042 = vtanh.f32 %v836_v46  ;;  %v871_v35 = vpop.f32.mrf.mxu2  ;;  %v3670_v55 = vperm.slane %v3228_v52, 5 }
 0x10b   :  { %v2041_v31 = vpop.eup %2040  ;;  %vm1064_vm9 = vcmp.eq.f32.partialorder %v1063_v9, 8.507059e+37  ;;  %v1066_v45 = vor.u32 1.1754944e-38, %v1065_v15  ;;  %v1073_v11 = vadd.f32 %v4199_v7, %v4198_v39  ;;  %vm1074_vm10 = vweird.f32 %v4200_v2 }
 0x10c   :  { %v1446_v26 = vadd.f32 %v1443_v22, %v1438_v3  ;;  %v1421_v30 = vmul.f32 %v2041_v31, %v1397_v21  ;;  %vm1075_vm11 = vweird.f32 %v4199_v7  ;;  %v854_v1 = vadd.f32 %v853_v16, %v3670_v55 }
 0x10d   :  { %v1067_v0 = vsel %vm1064_vm9, %v1066_v45, %v1062_v20  ;;  %vm3677_vm12 = vmor %vm1074_vm10, %vm1075_vm11  ;;  %v1078_v40 = vand.u32 2147483647, %v4200_v2  ;;  %v1080_v24 = vand.u32 2147483648, %v4200_v2  ;;  %v3685_v32 = vstv %s3641_s13  ;;  %v889_v27 = vpop.f32.mrf.mxu3  ;;  %v4209_v2 = vld [vmem:[#allocation13_spill] sm:$0xff] }
 0x10e   :  { %v1451_v63 = vmul.f32 %v3367_v41, %v1421_v30  ;;  %v1382_v28 = vsub.f32 1.0, %v1067_v0  ;;  %v1077_v25 = vsel %vm3677_vm12, %v4199_v7, %v1073_v11  ;;  %2044 = vtanh.f32 %v854_v1  ;;  %v4210_v1 = vld [vmem:[#allocation10_spill] sm:$0xff] }
 0x10f   :  { %vm1079_vm13 = vcmp.eq.f32.partialorder %v1078_v40, 8.507059e+37  ;;  %v1081_v16 = vor.u32 1.1754944e-38, %v1080_v24  ;;  %v3691_v38 = vperm.slane %v3228_v52, 6  ;;  %v1088_v41 = vadd.f32 %v3395_v61, %v3436_v51  ;;  %v3701_v14 = vpop.f32.mrf.mxu0 }
 0x110   :  { %v2043_v18 = vpop.eup %2042  ;;  %v3695_v36 = vadd.f32 %v1451_v63, %v1446_v26  ;;  %vm1089_vm14 = vweird.f32 %v3333_v48  ;;  %vm1090_vm15 = vweird.f32 %v3395_v61  ;;  %v1093_v4 = vand.u32 2147483647, %v3333_v48 }
 0x111   :  { %v1406_v23 = vmul.f32 %v2043_v18, %v1382_v28  ;;  %v1082_v34 = vsel %vm1079_vm13, %v1081_v16, %v1077_v25  ;;  %v872_v57 = vadd.f32 %v871_v35, %v3691_v38  ;;  %vm3704_vm0 = vmor %vm1089_vm14, %vm1090_vm15  ;;  %v3710_v60 = vstv %s3667_s14  ;;  %v3726_v9 = vpop.f32.mrf.mxu1 }
 0x112   :  { %v1383_v50 = vsub.f32 1.0, %v1082_v34  ;;  %v1092_v51 = vsel %vm3704_vm0, %v3395_v61, %v1088_v41  ;;  %v1095_v3 = vand.u32 2147483648, %v3333_v48  ;;  %v3716_v17 = vpop.f32.mrf.mxu2  ;;  %vm3719_vm1 = vcmp.eq.f32.partialorder %v1093_v4, 8.507059e+37  ;;  %v3735_v48 = vld [vmem:[%s3997_s7 + $0x18] sm:$0xff] }
 0x113   :  { %v1457_v46 = vmul.f32 %v3685_v32, %v1406_v23  ;;  %2046 = vtanh.f32 %v872_v57  ;;  %v3724_v33 = vperm.slane %v3228_v52, 7  ;;  %v1103_v61 = vadd.f32 %v3417_v19, %v3463_v8  ;;  %v3740_v52 = vld [vmem:[%s3997_s7 + $0x10] sm:$0xff]  ;;  %1522 = vmatpush.msra.mxu0 %v3735_v48  ;;  %1594 = vmatpush.msra.mxu2 %v3735_v48 }
 0x114   :  { %v1096_v15 = vor.u32 1.1754944e-38, %v1095_v3  ;;  %vm1104_vm3 = vweird.f32 %v3357_v42  ;;  %vm1105_vm4 = vweird.f32 %v3417_v19  ;;  %v2045_v22 = vpop.eup %2044  ;;  %v1108_v35 = vand.u32 2147483647, %v3357_v42  ;;  %v4213_v57 = vld [vmem:[#allocation15_spill] sm:$0xff] }
 0x115   :  { %v3743_v21 = vadd.f32 %v1457_v46, %v3592_v10  ;;  %v890_v8 = vadd.f32 %v889_v27, %v3724_v33  ;;  %vm3746_vm5 = vmor %vm1104_vm3, %vm1105_vm4  ;;  %v1110_v31 = vand.u32 2147483648, %v3357_v42  ;;  %v1407_v45 = vmul.f32 %v2045_v22, %v1383_v50  ;;  %v891_v11 = vpop.f32.mrf.mxu3  ;;  %1523 = vmatpush.msra.mxu0 %v3740_v52  ;;  %1595 = vmatpush.msra.mxu2 %v3740_v52  ;;  %v4218_v22 = vld [vmem:[#allocation18_spill] sm:$0xff] }
 0x116   :  { %v1097_v39 = vsel %vm3719_vm1, %v1096_v15, %v1092_v51  ;;  %v1107_v10 = vsel %vm3746_vm5, %v3417_v19, %v1103_v61  ;;  %v838_v7 = vadd.f32 %v3648_v6, %v3639_v59  ;;  %v3762_v30 = vstv %s3693_s3  ;;  %v3773_v19 = vld [vmem:[%s3997_s7 + $0x8] sm:$0xff]  ;;  %v4215_v51 = vld [vmem:[#allocation11_spill] sm:$0xff]  ;;  %s3887_s7 = sld [smem:[#allocation2 + $0x7]] }
 0x117   :  { %v1384_v26 = vsub.f32 1.0, %v1097_v39  ;;  %v1111_v42 = vor.u32 1.1754944e-38, %v1110_v31  ;;  %2048 = vtanh.f32 %v890_v8  ;;  %vm1109_vm6 = vcmp.eq.f32.partialorder %v1108_v35, 8.507059e+37  ;;  %v842_v6 = vpop.f32.mrf.mxu0  ;;  %1524 = vmatpush.msra.mxu0 %v3773_v19  ;;  %1596 = vmatpush.msra.mxu2 %v3773_v19 }
 0x118   :  { %v1178_v0 = vadd.f32 %v4209_v2, %v3420_v5  ;;  %vm1179_vm7 = vweird.f32 %v4210_v1  ;;  %vm1180_vm8 = vweird.f32 %v4209_v2  ;;  %v1183_v5 = vand.u32 2147483647, %v4210_v1 }
 0x119   :  { %v2047_v40 = vpop.eup %2046  ;;  %v1112_v24 = vsel %vm1109_vm6, %v1111_v42, %v1107_v10  ;;  %vm3780_vm9 = vmor %vm1179_vm7, %vm1180_vm8  ;;  %v1185_v28 = vand.u32 2147483648, %v4210_v1  ;;  %2050 = vtanh.f32 %v838_v7  ;;  %v3789_v25 = vmul.f32 %v3710_v60, %v1407_v45  ;;  %v860_v50 = vpop.f32.mrf.mxu1  ;;  %1525 = vmatpush.msra.mxu0 %v3778_v54  ;;  %1597 = vmatpush.msra.mxu2 %v3778_v54  ;;  %v4230_v42 = vld [vmem:[#allocation7_spill] sm:$0xff] }
 0x11a   :  { %v1408_v27 = vmul.f32 %v2047_v40, %v1384_v26  ;;  %v1182_v16 = vsel %vm3780_vm9, %v4209_v2, %v1178_v0  ;;  %v856_v18 = vadd.f32 %v3661_v58, %v3670_v55  ;;  %v3796_v41 = vpop.f32.mrf.mxu2  ;;  %v1385_v23 = vsub.f32 1.0, %v1112_v24  ;;  %v4219_v26 = vld [vmem:[#allocation6_spill] sm:$0xff] }
 0x11b   :  { %vm1184_vm10 = vcmp.eq.f32.partialorder %v1183_v5, 8.507059e+37  ;;  %v1186_v34 = vor.u32 1.1754944e-38, %v1185_v28  ;;  %v1193_v4 = vadd.f32 %v4214_v12, %v4213_v57  ;;  %vm1194_vm11 = vweird.f32 %v4215_v51 }
 0x11c   :  { %vm1195_vm12 = vweird.f32 %v4214_v12  ;;  %v1198_v3 = vand.u32 2147483647, %v4215_v51  ;;  %v1200_v58 = vand.u32 2147483648, %v4215_v51  ;;  %2052 = vtanh.f32 %v856_v18 }
 0x11d   :  { %v2049_v46 = vpop.eup %2048  ;;  %v1187_v13 = vsel %vm1184_vm10, %v1186_v34, %v1182_v16  ;;  %vm3806_vm13 = vmor %vm1194_vm11, %vm1195_vm12  ;;  %v874_v61 = vadd.f32 %v3716_v17, %v3691_v38  ;;  %v1208_v8 = vadd.f32 %v4218_v22, %v3510_v44  ;;  %v3815_v20 = vmul.f32 %v3762_v30, %v1408_v27  ;;  %v3822_v39 = vpop.f32.mrf.mxu3  ;;  %v4222_v16 = vld [vmem:[#allocation14_spill] sm:$0xff] }
 0x11e   :  { %v3817_v35 = vmul.f32 %v2049_v46, %v1385_v23  ;;  %v1390_v31 = vsub.f32 1.0, %v1187_v13  ;;  %v1197_v45 = vsel %vm3806_vm13, %v4214_v12, %v1193_v4  ;;  %v1201_v7 = vor.u32 1.1754944e-38, %v1200_v58  ;;  %v4224_v58 = vld [vmem:[#allocation16_spill] sm:$0xff]  ;;  %v4225_v13 = vld [vmem:[#allocation21_spill] sm:$0xff] }
 0x11f   :  { %v2051_v10 = vpop.eup %2050  ;;  %vm1209_vm14 = vweird.f32 %v4219_v26  ;;  %vm1210_vm15 = vweird.f32 %v4218_v22  ;;  %v1213_v44 = vand.u32 2147483647, %v4219_v26  ;;  %vm1199_vm0 = vcmp.eq.f32.partialorder %v1198_v3, 8.507059e+37  ;;  %v4223_v3 = vld [vmem:[#allocation20_spill] sm:$0xff] }
 0x120   :  { %v1414_v17 = vmul.f32 %v2051_v10, %v1390_v31  ;;  %vm3827_vm1 = vmor %vm1209_vm14, %vm1210_vm15  ;;  %v1215_v2 = vand.u32 2147483648, %v4219_v26  ;;  %2054 = vtanh.f32 %v874_v61  ;;  %v1202_v0 = vsel %vm1199_vm0, %v1201_v7, %v1197_v45  ;;  %v4228_v26 = vld [vmem:[#allocation22_spill] sm:$0xff] }
 0x121   :  { %v1212_v1 = vsel %vm3827_vm1, %v4218_v22, %v1208_v8  ;;  %v892_v6 = vadd.f32 %v891_v11, %v3724_v33  ;;  %v1223_v40 = vadd.f32 %v3486_v49, %v3541_v37  ;;  %v1391_v63 = vsub.f32 1.0, %v1202_v0 }
 0x122   :  { %v1458_v24 = vmul.f32 %v3685_v32, %v1414_v17  ;;  %vm1214_vm3 = vcmp.eq.f32.partialorder %v1213_v44, 8.507059e+37  ;;  %v1216_v5 = vor.u32 1.1754944e-38, %v1215_v2  ;;  %v878_v28 = vpop.f32.mrf.mxu2  ;;  %v2053_v27 = vpop.eup %2052  ;;  %vm1224_vm4 = vweird.f32 %v4222_v16  ;;  %v4229_v44 = vld [vmem:[#allocation19_spill] sm:$0xff] }
 0x123   :  { %vm1225_vm5 = vweird.f32 %v3486_v49  ;;  %v1228_v18 = vand.u32 2147483647, %v4222_v16  ;;  %v1230_v23 = vand.u32 2147483648, %v4222_v16  ;;  %v1415_v34 = vmul.f32 %v2053_v27, %v1391_v63  ;;  %v4233_v28 = vld [vmem:[#allocation17_spill] sm:$0xff] }
 0x124   :  { %v3844_v11 = vadd.f32 %v1458_v24, %v3624_v56  ;;  %v1217_v37 = vsel %vm1214_vm3, %v1216_v5, %v1212_v1  ;;  %vm1226_vm6 = vmor %vm1224_vm4, %vm1225_vm5  ;;  %v841_v57 = vadd.f32 %v3701_v14, %v3639_v59  ;;  %2056 = vtanh.f32 %v892_v6 }
 0x125   :  { %v1392_v12 = vsub.f32 1.0, %v1217_v37  ;;  %v1227_v4 = vsel %vm1226_vm6, %v3486_v49, %v1223_v40  ;;  %v1231_v50 = vor.u32 1.1754944e-38, %v1230_v23  ;;  %vm1229_vm7 = vcmp.eq.f32.partialorder %v1228_v18, 8.507059e+37  ;;  %v896_v56 = vpop.f32.mrf.mxu3 }
 0x126   :  { %v2055_v51 = vpop.eup %2054  ;;  %v1298_v46 = vadd.f32 %v4224_v58, %v4223_v3  ;;  %vm1299_vm8 = vweird.f32 %v4225_v13  ;;  %vm1300_vm9 = vweird.f32 %v4224_v58  ;;  %v1303_v49 = vand.u32 2147483647, %v4225_v13 }
 0x127   :  { %v1416_v15 = vmul.f32 %v2055_v51, %v1392_v12  ;;  %v1232_v61 = vsel %vm1229_vm7, %v1231_v50, %v1227_v4  ;;  %vm3853_vm10 = vmor %vm1299_vm8, %vm1300_vm9  ;;  %v1305_v59 = vand.u32 2147483648, %v4225_v13  ;;  %v3860_v14 = vmul.f32 %v3710_v60, %v1415_v34 }
 0x128   :  { %v1302_v8 = vsel %vm3853_vm10, %v4224_v58, %v1298_v46  ;;  %2058 = vtanh.f32 %v841_v57  ;;  %v859_v31 = vadd.f32 %v3726_v9, %v3670_v55  ;;  %v1393_v10 = vsub.f32 1.0, %v1232_v61 }
 0x129   :  { %v3868_v45 = vmul.f32 %v3762_v30, %v1416_v15  ;;  %v1306_v7 = vor.u32 1.1754944e-38, %v1305_v59  ;;  %v1313_v17 = vadd.f32 %v4229_v44, %v4228_v26  ;;  %vm1304_vm11 = vcmp.eq.f32.partialorder %v1303_v49, 8.507059e+37 }
 0x12a   :  { %vm1314_vm12 = vweird.f32 %v4230_v42  ;;  %vm1315_vm13 = vweird.f32 %v4229_v44  ;;  %v1318_v2 = vand.u32 2147483647, %v4230_v42  ;;  %v2057_v0 = vpop.eup %2056  ;;  %v1320_v55 = vand.u32 2147483648, %v4230_v42 }
 0x12b   :  { %v1307_v1 = vsel %vm1304_vm11, %v1306_v7, %v1302_v8  ;;  %vm3875_vm14 = vmor %vm1314_vm12, %vm1315_vm13  ;;  %2060 = vtanh.f32 %v859_v31  ;;  %v877_v9 = vadd.f32 %v3796_v41, %v3691_v38  ;;  %v1328_v63 = vadd.f32 %v3514_v62, %v3544_v53  ;;  %v1495_v38 = vld [vmem:[%s3999_s9] sm:$0x3f] }
 0x12c   :  { %v1398_v40 = vsub.f32 1.0, %v1307_v1  ;;  %v1317_v24 = vsel %vm3875_vm14, %v4229_v44, %v1313_v17  ;;  %vm1319_vm15 = vcmp.eq.f32.partialorder %v1318_v2, 8.507059e+37  ;;  %v1321_v5 = vor.u32 1.1754944e-38, %v1320_v55 }
 0x12d   :  { %vm1329_vm0 = vweird.f32 %v4233_v28  ;;  %vm1330_vm1 = vweird.f32 %v3514_v62  ;;  %v1333_v27 = vand.u32 2147483647, %v4233_v28  ;;  %v1335_v41 = vand.u32 2147483648, %v4233_v28 }
 0x12e   :  { %v2059_v16 = vpop.eup %2058  ;;  %vm3892_vm3 = vmor %vm1329_vm0, %vm1330_vm1  ;;  %2062 = vtanh.f32 %v877_v9  ;;  %v895_v53 = vadd.f32 %v3822_v39, %v3724_v33  ;;  %v1343_v18 = vadd.f32 %v3553_v43, %v3653_v47  ;;  %v1322_v34 = vsel %vm1319_vm15, %v1321_v5, %v1317_v24  ;;  %v3938_v24 = vld [vmem:[%s3998_s8] ss:$0 sm:$0xff] }
 0x12f   :  { %v1422_v23 = vmul.f32 %v2059_v16, %v1398_v40  ;;  %v1332_v37 = vsel %vm3892_vm3, %v3514_v62, %v1328_v63  ;;  %vm1334_vm4 = vcmp.eq.f32.partialorder %v1333_v27, 8.507059e+37  ;;  %v1399_v57 = vsub.f32 1.0, %v1322_v34 }
 0x130   :  { %v1336_v12 = vor.u32 1.1754944e-38, %v1335_v41  ;;  %vm1344_vm5 = vweird.f32 %v3503_v29  ;;  %vm1345_vm6 = vweird.f32 %v3553_v43  ;;  %v1348_v47 = vand.u32 2147483647, %v3503_v29 }
 0x131   :  { %v2061_v4 = vpop.eup %2060  ;;  %v1459_v50 = vmul.f32 %v3685_v32, %v1422_v23  ;;  %vm3907_vm7 = vmor %vm1344_vm5, %vm1345_vm6  ;;  %v1350_v39 = vand.u32 2147483648, %v3503_v29  ;;  %2064 = vtanh.f32 %v895_v53  ;;  %v1468_v58 = vadd.f32 %v3789_v25, %v3743_v21 }
 0x132   :  { %v1423_v62 = vmul.f32 %v2061_v4, %v1399_v57  ;;  %v1337_v51 = vsel %vm1334_vm4, %v1336_v12, %v1332_v37  ;;  %v1347_v3 = vsel %vm3907_vm7, %v3553_v43, %v1343_v18  ;;  %v1417_v32 = vmul.f32 %v2057_v0, %v1393_v10  ;;  %v1496_v0 = vld [vmem:[%s4000_s10] sm:$0x3f] }
 0x133   :  { %v1462_v46 = vadd.f32 %v1459_v50, %v3695_v36  ;;  %v1400_v13 = vsub.f32 1.0, %v1337_v51  ;;  %v1351_v56 = vor.u32 1.1754944e-38, %v1350_v39  ;;  %vm1349_vm8 = vcmp.eq.f32.partialorder %v1348_v47, 8.507059e+37 }
 0x134   :  { %v2063_v15 = vpop.eup %2062  ;;  %v1467_v61 = vmul.f32 %v3710_v60, %v1423_v62  ;;  %v1476_v29 = vadd.f32 %v3815_v20, %v1468_v58  ;;  %v1480_v22 = vstv %s3887_s7  ;;  %v1469_v43 = vadd.f32 %v3860_v14, %v3844_v11 }
 0x135   :  { %v1424_v49 = vmul.f32 %v2063_v15, %v1400_v13  ;;  %v1352_v59 = vsel %vm1349_vm8, %v1351_v56, %v1347_v3  ;;  %v1481_v8 = vmul.f32 %v1480_v22, %v3817_v35  ;;  %v1482_v60 = vmul.f32 %v1480_v22, %v1417_v32 }
 0x136   :  { %v1401_v21 = vsub.f32 1.0, %v1352_v59  ;;  %v1470_v25 = vadd.f32 %v1467_v61, %v1462_v46  ;;  %v1477_v7 = vadd.f32 %v3868_v45, %v1469_v43  ;;  %vm1500_vm9 = vcmask 261120  }
 0x137   :  { %v2065_v31 = vpop.eup %2064  ;;  %v1475_v36 = vmul.f32 %v3762_v30, %v1424_v49  ;;  %v1484_v10 = vadd.f32 %v1481_v8, %v1476_v29  ;;  %v2085_v1 = vmov 0   ;;  %vm1544_vm10 = vcmask 1044480  }
 0x138   :  { %v1425_v26 = vmul.f32 %v2065_v31, %v1401_v21  ;;  %v1485_v44 = vadd.f32 %v1482_v60, %v1477_v7  ;;  %1920 = vset.pattern.permute.xlu0 %v2085_v1  ;;  %vm1568_vm11 = vcmask 62464   ;;  %vm1635_vm12 = vcmask 128064  }
 0x139   :  { %v1487_v20 = vmax.f32 %v1484_v10, 0.0  ;;  %v1478_v17 = vadd.f32 %v1475_v36, %v1470_v25  ;;  %vm1702_vm13 = vcmask 193664   ;;  %vm1769_vm14 = vcmask 259264  }
 0x13a   :  { %v1483_v42 = vmul.f32 %v1480_v22, %v1425_v26  ;;  %v1488_v35 = vmax.f32 %v1485_v44, 0.0 }
 0x13b   :  { %1637 = vrot.lane.b32.xlu0 %v1487_v20, %s2082_s22  ;;  %1891 = vmatmul.msk.f32.vlgmr.msra.gmra.mxu0 %vm1500_vm9, %v1487_v20 }
 0x13c   :  { %v1486_v11 = vadd.f32 %v1483_v42, %v1478_v17  ;;  %1572 = vrot.lane.b32.xlu2 %v1488_v35, %s2083_s23 }
 0x13e   :  { %v1489_v14 = vmax.f32 %v1486_v11, 0.0 }
 0x140   :  { %1641 = vrot.lane.b32.xlu1 %v1489_v14, %s2082_s22 }
 0x143   :  { %1639 = vrot.lane.b32.xlu0 %v1488_v35, %s2082_s22  ;;  %1892 = vmatmul.msk.f32.gmra.mxu0 %vm1500_vm9, %v1488_v35 }
 0x144   :  { %1704 = vrot.lane.b32.xlu2 %v1487_v20, %s2084_s24 }
 0x148   :  { %1570 = vrot.lane.b32.xlu1 %v1487_v20, %s2083_s23 }
 0x14b   :  { %1574 = vrot.lane.b32.xlu0 %v1489_v14, %s2083_s23  ;;  %1893 = vmatmul.msk.f32.gmra.mxu0 %vm1500_vm9, %v1489_v14 }
 0x14c   :  { %1708 = vrot.lane.b32.xlu2 %v1489_v14, %s2084_s24 }
 0x150   :  { %1706 = vrot.lane.b32.xlu1 %v1488_v35, %s2084_s24 }
 0x153   :  { %1538 = vperm.xlu0 %1920, %v1496_v0  }
 0x196   :  { %v1573_v40 = vpop.permute.xlu2 %1572 }
 0x19e   :  { %v1705_v3 = vpop.permute.xlu2 %1704 }
 0x1a6   :  { %v1709_v32 = vpop.permute.xlu2 %1708 }
 0x1ad   :  { %v1638_v45 = vpop.permute.xlu0 %1637 }
 0x1b2   :  { %v1642_v30 = vpop.permute.xlu1 %1641 }
 0x1b5   :  { %v1640_v55 = vpop.permute.xlu0 %1639 }
 0x1b8   :  { %v1527_v2 = vpop.f32.mrf.mxu0 }
 0x1b9   :  { %v1528_v16 = vadd.f32 %v3938_v24, %v1527_v2 }
 0x1ba   :  { %v1571_v6 = vpop.permute.xlu1 %1570 }
 0x1bb   :  { %1896 = vmatmul.msk.f32.vlgmr.msra.gmra.mxu2 %vm1500_vm9, %v1571_v6 }
 0x1bd   :  { %v1575_v28 = vpop.permute.xlu0 %1574 }
 0x1c0   :  { %v1530_v9 = vpop.f32.mrf.mxu0 }
 0x1c1   :  { %v1531_v27 = vadd.f32 %v3938_v24, %v1530_v9 }
 0x1c2   :  { %v1707_v58 = vpop.permute.xlu1 %1706 }
 0x1c3   :  { %1897 = vmatmul.msk.f32.gmra.mxu2 %vm1500_vm9, %v1573_v40 }
 0x1c5   :  { %v1539_v18 = vpop.permute.xlu0 %1538 }
 0x1c8   :  { %v1533_v63 = vpop.f32.mrf.mxu0 }
 0x1c9   :  { %v1534_v5 = vadd.f32 %v3938_v24, %v1533_v63 }
 0x1cb   :  { %1894 = vmatpush.msk.msra.mxu1 %vm1544_vm10, %v1534_v5  ;;  %1898 = vmatmul.msk.f32.gmra.mxu2 %vm1500_vm9, %v1575_v28 }
 0x1cd   :  { %1562 = vmatpush.msra.mxu1 %v1531_v27 }
 0x1cf   :  { %1563 = vmatpush.msra.mxu1 %v1528_v16 }
 0x1d0   :  { %1895 = vmatmul.msk.f32.vlgmr.msra.gmra.mxu1 %vm517_vm2, %v1495_v38 }
 0x1d1   :  { %1661 = vmatpush.msrb.mxu1 %v3735_v48 }
 0x1d3   :  { %1662 = vmatpush.msrb.mxu1 %v3740_v52 }
 0x1d5   :  { %1663 = vmatpush.msrb.mxu1 %v3773_v19 }
 0x1d7   :  { %1664 = vmatpush.msrb.mxu1 %v3778_v54 }
 0x1d8   :  { %1901 = vmatmul.msk.f32.vlgmr.msrb.gmra.mxu1 %vm1500_vm9, %v1638_v45 }
 0x1e0   :  { %1902 = vmatmul.msk.f32.gmra.mxu1 %vm1500_vm9, %v1640_v55 }
 0x1e8   :  { %1903 = vmatmul.msk.f32.gmra.mxu1 %vm1500_vm9, %v1642_v30 }
 0x23e   :  { %v1599_v41 = vpop.f32.mrf.mxu2 }
 0x23f   :  { %v1600_v4 = vadd.f32 %v3938_v24, %v1599_v41 }
 0x246   :  { %v1602_v53 = vpop.f32.mrf.mxu2 }
 0x247   :  { %v1603_v12 = vadd.f32 %v3938_v24, %v1602_v53 }
 0x24d   :  { %v1565_v23 = vpop.f32.mrf.mxu1 }
 0x24e   :  { %v1566_v34 = vadd.f32 %v1565_v23, %v1539_v18  ;;  %v1605_v37 = vpop.f32.mrf.mxu2 }
 0x24f   :  { %v1606_v57 = vadd.f32 %v3938_v24, %v1605_v37 }
 0x250   :  { %1569 = vst.msk [vmem:[%s4001_s11] sm:$0x3f] %vm1568_vm11, %v1566_v34 }
 0x251   :  { %1899 = vmatpush.msk.msrb.mxu2 %vm1544_vm10, %v1606_v57 }
 0x253   :  { %1625 = vmatpush.msrb.mxu2 %v1603_v12 }
 0x255   :  { %v1666_v50 = vpop.f32.mrf.mxu1  ;;  %1626 = vmatpush.msrb.mxu2 %v1600_v4 }
 0x256   :  { %1900 = vmatmul.msk.f32.vlgmr.msrb.gmra.mxu2 %vm517_vm2, %v1495_v38  ;;  %v1667_v51 = vadd.f32 %v3938_v24, %v1666_v50 }
 0x25d   :  { %v1669_v33 = vpop.f32.mrf.mxu1 }
 0x25e   :  { %v1670_v62 = vadd.f32 %v3938_v24, %v1669_v33 }
 0x265   :  { %v1672_v47 = vpop.f32.mrf.mxu1 }
 0x266   :  { %v1673_v39 = vadd.f32 %v3938_v24, %v1672_v47 }
 0x268   :  { %1904 = vmatpush.msk.msra.mxu3 %vm1544_vm10, %v1673_v39 }
 0x26a   :  { %1692 = vmatpush.msra.mxu3 %v1670_v62 }
 0x26c   :  { %1693 = vmatpush.msra.mxu3 %v1667_v51 }
 0x26d   :  { %1905 = vmatmul.msk.f32.vlgmr.msra.gmra.mxu3 %vm517_vm2, %v1495_v38 }
 0x26e   :  { %1728 = vmatpush.msrb.mxu3 %v3735_v48 }
 0x270   :  { %1729 = vmatpush.msrb.mxu3 %v3740_v52 }
 0x272   :  { %1730 = vmatpush.msrb.mxu3 %v3773_v19 }
 0x274   :  { %1731 = vmatpush.msrb.mxu3 %v3778_v54 }
 0x275   :  { %1906 = vmatmul.msk.f32.vlgmr.msrb.gmra.mxu3 %vm1500_vm9, %v1705_v3 }
 0x27d   :  { %1907 = vmatmul.msk.f32.gmra.mxu3 %vm1500_vm9, %v1707_v58 }
 0x285   :  { %1908 = vmatmul.msk.f32.gmra.mxu3 %vm1500_vm9, %v1709_v32 }
 0x2d9   :  { %v1628_v46 = vpop.f32.mrf.mxu2 }
 0x2da   :  { %v1629_v13 = vadd.f32 %v1628_v46, %v1539_v18 }
 0x2dc   :  { %1632 = vrot.lane.b32.xlu1 %v1629_v13, %s2086_s27 }
 0x2f0   :  { %v1695_v48 = vpop.f32.mrf.mxu3 }
 0x2f1   :  { %v1696_v56 = vadd.f32 %v1695_v48, %v1539_v18 }
 0x2f3   :  { %1699 = vrot.lane.b32.xlu2 %v1696_v56, %s2087_s5 }
 0x2f8   :  { %v1733_v52 = vpop.f32.mrf.mxu3 }
 0x2f9   :  { %v1734_v29 = vadd.f32 %v3938_v24, %v1733_v52 }
 0x300   :  { %v1736_v19 = vpop.f32.mrf.mxu3 }
 0x301   :  { %v1737_v61 = vadd.f32 %v3938_v24, %v1736_v19 }
 0x308   :  { %v1739_v15 = vpop.f32.mrf.mxu3 }
 0x309   :  { %v1740_v54 = vadd.f32 %v3938_v24, %v1739_v15 }
 0x30b   :  { %1909 = vmatpush.msk.msrb.mxu0 %vm1544_vm10, %v1740_v54 }
 0x30d   :  { %1759 = vmatpush.msrb.mxu0 %v1737_v61 }
 0x30f   :  { %1760 = vmatpush.msrb.mxu0 %v1734_v29 }
 0x310   :  { %1910 = vmatmul.msk.f32.vlgmr.msrb.gmra.mxu0 %vm517_vm2, %v1495_v38 }
 0x34d   :  { %v1700_v49 = vpop.permute.xlu2 %1699 }
 0x34e   :  { %v1633_v22 = vpop.permute.xlu1 %1632 }
 0x34f   :  { %1636 = vst.msk [vmem:[%s4001_s11] sm:$0x3f] %vm1635_vm12, %v1633_v22 }
 0x350   :  { %1703 = vst.msk [vmem:[%s4001_s11] sm:$0x3f] %vm1702_vm13, %v1700_v49 }
 0x38d   :  { %v1762_v59 = vpop.f32.mrf.mxu0 }
 0x38e   :  { %v1763_v8 = vadd.f32 %v1762_v59, %v1539_v18 }
 0x390   :  { %1766 = vrot.lane.b32.xlu1 %v1763_v8, %s2088_s12 }
 0x402   :  { %v1767_v43 = vpop.permute.xlu1 %1766 }
 0x403   :  { %1770 = vst.msk [vmem:[%s4001_s11] sm:$0x3f] %vm1769_vm14, %v1767_v43 }
 0x404   :  { %1775 = vsyncpa [#allocation3], 1 }

</bundles_post_ra>
